<compile_context>
chip_gen: v7x
topology: tpu7x:2x2x1
jax: 0.10.0
libtpu: 0.0.40
codegen_flags: <defaults>
</compile_context>

<pallas_src>
import jax
import jax.numpy as jnp
from jax import lax
from jax.experimental import pallas as pl
from jax.experimental.pallas import tpu as pltpu


# ---------------------------------------------------------------------------
# Tiling helper
# ---------------------------------------------------------------------------
def _row_tile(n, cap=512):
    """Largest legal row (sublane) tile <= cap.

    Either the full dim (always legal for BlockSpec) or a multiple of 8;
    Pallas masks the partial tail block when the tile does not divide n.
    """
    if n <= cap:
        return n
    return cap - (cap % 8)


# ---------------------------------------------------------------------------
# Pallas kernels
# ---------------------------------------------------------------------------
def _pg_conv_kernel(x_ref, w_ref, b_ref, pg_ref):
    # Fused phi/g 1x1 convs: one (tm, C) @ (C, 2D) matmul.
    pg_ref[...] = (
        jnp.dot(x_ref[...], w_ref[...], preferred_element_type=jnp.float32)
        + b_ref[...]
    ).astype(pg_ref.dtype)


def _combine_kernel(pg_ref, wfold_ref, wtheta_ref, btheta_ref, bfold_ref,
                    wcomb_ref, bcomb_ref):
    # Per batch:
    #   Wb     = (phi^T @ g) @ (W_fold / Nkv)          (D, C)
    #   W_comb = W_theta @ Wb                          (C, C)
    #   b_comb = b_theta @ Wb + b_fold                 (1, C)
    # phi / g are (Nkv, D); contract over Nkv (leading dim of both) so neither
    # operand needs a wrapper-side transpose.
    d = wfold_ref.shape[0]
    pg = pg_ref[...]                                    # (Nkv, 2D)
    phi = pg[:, :d]                                     # (Nkv, D)
    g = pg[:, d:]                                       # (Nkv, D)
    m = lax.dot_general(
        phi, g, (((0,), (0,)), ((), ())),
        preferred_element_type=jnp.float32)             # (D, D) == phi^T @ g
    wb = jnp.dot(m, wfold_ref[...], preferred_element_type=jnp.float32)  # (D, C)
    wcomb_ref[...] = jnp.dot(
        wtheta_ref[...], wb, preferred_element_type=jnp.float32
    ).astype(wcomb_ref.dtype)
    bcomb_ref[...] = (
        jnp.dot(btheta_ref[...], wb, preferred_element_type=jnp.float32)
        + bfold_ref[...]
    ).astype(bcomb_ref.dtype)


def _proj_residual_kernel(x_ref, w_ref, b_ref, o_ref):
    # z = x @ W_comb + b_comb + x  (theta conv + attention + W proj + BN +
    # residual, all fused — theta never round-trips through HBM).
    x = x_ref[...]
    o_ref[...] = (
        jnp.dot(x, w_ref[...], preferred_element_type=jnp.float32)
        + b_ref[...]
        + x
    ).astype(o_ref.dtype)


# ---------------------------------------------------------------------------
# Pallas wrappers
# ---------------------------------------------------------------------------
def fused_pg_conv(x_tok, w_pg, b_pg, tm=512):
    """x_tok: (M, C), w_pg: (C, 2D), b_pg: (2D,) -> pg: (M, 2D)."""
    M, C = x_tok.shape
    twoD = w_pg.shape[1]
    tm = _row_tile(M, tm)
    return pl.pallas_call(
        _pg_conv_kernel,
        out_shape=jax.ShapeDtypeStruct((M, twoD), x_tok.dtype),
        grid=(pl.cdiv(M, tm),),
        in_specs=[
            pl.BlockSpec((tm, C), lambda i: (i, 0)),
            pl.BlockSpec((C, twoD), lambda i: (0, 0)),
            pl.BlockSpec((1, twoD), lambda i: (0, 0)),
        ],
        out_specs=pl.BlockSpec((tm, twoD), lambda i: (i, 0)),
        compiler_params=pltpu.CompilerParams(dimension_semantics=("parallel",)),
    )(x_tok, w_pg, b_pg[None, :])


def batch_combine(pg_pool, w_fold_scaled, w_theta, b_theta, b_fold):
    """Per-batch combined projection.

    pg_pool: (B, Nkv, 2D), w_fold_scaled: (D, C), w_theta: (C, D),
    b_theta: (1, D), b_fold: (1, C)  ->  W_comb: (B, C, C), b_comb: (B, 1, C).
    """
    B, Nkv, twoD = pg_pool.shape
    D = twoD // 2
    C = w_fold_scaled.shape[1]
    return pl.pallas_call(
        _combine_kernel,
        out_shape=(
            jax.ShapeDtypeStruct((B, C, C), pg_pool.dtype),
            jax.ShapeDtypeStruct((B, 1, C), pg_pool.dtype),
        ),
        grid=(B,),
        in_specs=[
            pl.BlockSpec((None, Nkv, twoD), lambda b: (b, 0, 0)),  # batch squeezed
            pl.BlockSpec((D, C), lambda b: (0, 0)),
            pl.BlockSpec((C, D), lambda b: (0, 0)),
            pl.BlockSpec((1, D), lambda b: (0, 0)),
            pl.BlockSpec((1, C), lambda b: (0, 0)),
        ],
        out_specs=(
            pl.BlockSpec((None, C, C), lambda b: (b, 0, 0)),
            pl.BlockSpec((None, 1, C), lambda b: (b, 0, 0)),
        ),
        compiler_params=pltpu.CompilerParams(dimension_semantics=("parallel",)),
    )(pg_pool, w_fold_scaled, w_theta, b_theta, b_fold)


def proj_bn_residual(x_tok, w_comb, b_comb, tm=512):
    """x_tok: (B, Nq, C), w_comb: (B, C, C), b_comb: (B, 1, C) -> (B, Nq, C)."""
    B, Nq, C = x_tok.shape
    tm = _row_tile(Nq, tm)
    return pl.pallas_call(
        _proj_residual_kernel,
        out_shape=jax.ShapeDtypeStruct((B, Nq, C), x_tok.dtype),
        grid=(B, pl.cdiv(Nq, tm)),
        in_specs=[
            pl.BlockSpec((None, tm, C), lambda b, i: (b, i, 0)),
            pl.BlockSpec((None, C, C), lambda b, i: (b, 0, 0)),
            pl.BlockSpec((None, 1, C), lambda b, i: (b, 0, 0)),
        ],
        out_specs=pl.BlockSpec((None, tm, C), lambda b, i: (b, i, 0)),
        compiler_params=pltpu.CompilerParams(
            dimension_semantics=("parallel", "parallel")),
    )(x_tok, w_comb, b_comb)


# ---------------------------------------------------------------------------
# Full forward (glue in plain JAX, hot path in Pallas)
# ---------------------------------------------------------------------------
@jax.jit
def nonlocal_block_forward(x, params):
    """x: (B, C, H, W) NCHW float32 -> (B, C, H, W)."""
    B, C, H, W = x.shape
    D = params["theta_w"].shape[1]          # inter_channels = C // 2
    Nq = H * W
    Nkv = (H // 2) * (W // 2)               # sub_sample: H, W assumed even

    # NCHW -> NHWC tokens (the only two layout transposes in the forward).
    x_nhwc = jnp.transpose(x, (0, 2, 3, 1))                 # (B, H, W, C)
    x_tok_flat = x_nhwc.reshape(B * Nq, C)

    # --- fused phi / g 1x1 convs (x read from HBM once for the kv path) ----
    w_pg = jnp.concatenate([params["phi_w"], params["g_w"]], axis=1)   # (C, 2D)
    b_pg = jnp.concatenate([params["phi_b"], params["g_b"]])           # (2D,)
    pg_tok = fused_pg_conv(x_tok_flat, w_pg, b_pg)                     # (M, 2D)

    # --- sub_sample: MaxPool2d(2) on phi/g ---------------------------------
    # TODO(synk): fuse the 2x2 max-pool into the phi/g conv kernel to avoid the
    # full-resolution phi/g HBM round trip (cheap VPU max under the matmul).
    pg_pool = (
        pg_tok.reshape(B, H // 2, 2, W // 2, 2, 2 * D)
        .max(axis=(2, 4))
        .reshape(B, Nkv, 2 * D)
    )

    # --- BatchNorm2d (eval) folded into the W projection -------------------
    eps = 1e-5
    scale = params["bn_gamma"] / jnp.sqrt(params["bn_var"] + eps)           # (C,)
    w_fold = params["W_w"] * scale[None, :]                                 # (D, C)
    b_fold = (params["W_b"] - params["bn_mean"]) * scale + params["bn_beta"]  # (C,)

    # --- per-batch combined projection:  W_comb = W_theta (phi^T g) W_fold/Nkv
    w_comb, b_comb = batch_combine(
        pg_pool,
        w_fold * (1.0 / Nkv),
        params["theta_w"],
        params["theta_b"][None, :],
        b_fold[None, :],
    )                                                                        # (B,C,C), (B,1,C)

    # --- z = x @ W_comb + b_comb + x  (theta/attention/proj/BN/residual) ---
    z_tok = proj_bn_residual(x_nhwc.reshape(B, Nq, C), w_comb, b_comb)
    return jnp.transpose(z_tok.reshape(B, H, W, C), (0, 3, 1, 2))            # NCHW


# ---------------------------------------------------------------------------
# Pure-JAX reference (mirrors the PyTorch forward exactly, no reassociation)
# ---------------------------------------------------------------------------
def reference_forward(x, params):
    B, C, H, W = x.shape
    D = params["theta_w"].shape[1]

    def conv1x1(t, w, b):  # t NCHW, w (Cin, Cout), b (Cout,)
        return jnp.einsum("bchw,cd->bdhw", t, w) + b[None, :, None, None]

    def maxpool2(t):
        b_, c_, h_, w_ = t.shape
        return t.reshape(b_, c_, h_ // 2, 2, w_ // 2, 2).max(axis=(3, 5))

    g_x = maxpool2(conv1x1(x, params["g_w"], params["g_b"])).reshape(B, D, -1).transpose(0, 2, 1)
    theta_x = conv1x1(x, params["theta_w"], params["theta_b"]).reshape(B, D, -1).transpose(0, 2, 1)
    phi_x = maxpool2(conv1x1(x, params["phi_w"], params["phi_b"])).reshape(B, D, -1)
    f = theta_x @ phi_x
    f_div = f / f.shape[-1]
    y = f_div @ g_x
    y = y.transpose(0, 2, 1).reshape(B, D, H, W)
    Wy = conv1x1(y, params["W_w"], params["W_b"])
    eps = 1e-5
    Wy = (
        (Wy - params["bn_mean"][None, :, None, None])
        / jnp.sqrt(params["bn_var"][None, :, None, None] + eps)
        * params["bn_gamma"][None, :, None, None]
        + params["bn_beta"][None, :, None, None]
    )
    return Wy + x


# ---------------------------------------------------------------------------
if __name__ == "__main__":
    key = jax.random.PRNGKey(0)
    B, C, H, W = 2, 4, 16, 16
    D = C // 2  # inter_channels
    # NOTE: toy channel sizes (C=4, D=2) are padding-bound on the MXU; at
    # realistic non-local sizes pad C/D to multiples of 128 for lane-dense
    # unmasked stores and full MXU utilization.

    ks = jax.random.split(key, 12)
    params = {
        # 1x1 conv weights stored as (Cin, Cout); biases (Cout,)
        "theta_w": 0.1 * jax.random.normal(ks[0], (C, D), jnp.float32),
        "theta_b": 0.1 * jax.random.normal(ks[1], (D,), jnp.float32),
        "phi_w": 0.1 * jax.random.normal(ks[2], (C, D), jnp.float32),
        "phi_b": 0.1 * jax.random.normal(ks[3], (D,), jnp.float32),
        "g_w": 0.1 * jax.random.normal(ks[4], (C, D), jnp.float32),
        "g_b": 0.1 * jax.random.normal(ks[5], (D,), jnp.float32),
        "W_w": 0.1 * jax.random.normal(ks[6], (D, C), jnp.float32),
        "W_b": 0.1 * jax.random.normal(ks[7], (C,), jnp.float32),
        # BatchNorm2d (eval mode). Original init is gamma=0, beta=0 (=> z == x);
        # use non-zero synthetic values so the kernels are exercised.
        "bn_gamma": 1.0 + 0.1 * jax.random.normal(ks[8], (C,), jnp.float32),
        "bn_beta": 0.1 * jax.random.normal(ks[9], (C,), jnp.float32),
        "bn_mean": 0.1 * jax.random.normal(ks[10], (C,), jnp.float32),
        "bn_var": jax.random.uniform(ks[11], (C,), jnp.float32, 0.5, 1.5),
    }

    x = jax.random.normal(jax.random.PRNGKey(1), (B, C, H, W), jnp.float32)

    z = nonlocal_block_forward(x, params)
    z = jax.block_until_ready(z)

    z_ref = reference_forward(x, params)
    assert z.shape == (B, C, H, W)
    assert bool(jnp.all(jnp.isfinite(z)))
    assert bool(jnp.allclose(z, z_ref, rtol=1e-4, atol=1e-5)), "mismatch vs reference"

    print("KERNEL_OK")
</pallas_src>

<mosaic_0001>
module attributes {stable_mosaic.version = 11 : i64} {
  func.func @_combine_kernel(%arg0: i32, %arg1: memref<1x64x4xf32, #tpu.memory_space<vmem>>, %arg2: memref<2x4xf32, #tpu.memory_space<vmem>>, %arg3: memref<4x2xf32, #tpu.memory_space<vmem>>, %arg4: memref<1x2xf32, #tpu.memory_space<vmem>>, %arg5: memref<1x4xf32, #tpu.memory_space<vmem>>, %arg6: memref<1x4x4xf32, #tpu.memory_space<vmem>>, %arg7: memref<1x1x4xf32, #tpu.memory_space<vmem>>) attributes {dimension_semantics = [#tpu.dimension_semantics<parallel>], iteration_bounds = array<i64: 2>, scalar_prefetch = 0 : i64, scratch_operands = 0 : i64, tpu.core_type = #tpu.core_type<tc>, window_params = [{transform_indices = @transform_0, window_bounds = array<i64: 1, 64, 4>}, {pipeline_mode = #tpu.pipeline_mode<synchronous>, transform_indices = @transform_1, window_bounds = array<i64: 2, 4>}, {pipeline_mode = #tpu.pipeline_mode<synchronous>, transform_indices = @transform_2, window_bounds = array<i64: 4, 2>}, {pipeline_mode = #tpu.pipeline_mode<synchronous>, transform_indices = @transform_3, window_bounds = array<i64: 1, 2>}, {pipeline_mode = #tpu.pipeline_mode<synchronous>, transform_indices = @transform_4, window_bounds = array<i64: 1, 4>}, {transform_indices = @transform_5, window_bounds = array<i64: 1, 4, 4>}, {transform_indices = @transform_6, window_bounds = array<i64: 1, 1, 4>}]} {
    %c0 = arith.constant 0 : index
    %c0_0 = arith.constant 0 : index
    %c0_1 = arith.constant 0 : index
    %0 = vector.load %arg1[%c0, %c0_0, %c0_1] : memref<1x64x4xf32, #tpu.memory_space<vmem>>, vector<1x64x4xf32>
    %1 = vector.shape_cast %0 : vector<1x64x4xf32> to vector<64x4xf32>
    %2 = vector.extract_strided_slice %1 {offsets = [0, 0], sizes = [64, 2], strides = [1, 1]} : vector<64x4xf32> to vector<64x2xf32>
    %3 = vector.extract_strided_slice %1 {offsets = [0, 2], sizes = [64, 2], strides = [1, 1]} : vector<64x4xf32> to vector<64x2xf32>
    %cst = arith.constant dense<0.000000e+00> : vector<2x2xf32>
    %4 = tpu.matmul %2, %3, %cst {dimension_numbers = #tpu.dot_dimension_numbers<[0], [0], [1], [1], [0, 1, 1, 1], [], []>} : vector<64x2xf32>, vector<64x2xf32>, vector<2x2xf32> -> vector<2x2xf32>
    %c0_2 = arith.constant 0 : index
    %c0_3 = arith.constant 0 : index
    %5 = vector.load %arg2[%c0_2, %c0_3] : memref<2x4xf32, #tpu.memory_space<vmem>>, vector<2x4xf32>
    %cst_4 = arith.constant dense<0.000000e+00> : vector<2x4xf32>
    %6 = tpu.matmul %4, %5, %cst_4 {dimension_numbers = #tpu.dot_dimension_numbers<[1], [0], [0], [1], [0, 0, 1, 1], [], []>} : vector<2x2xf32>, vector<2x4xf32>, vector<2x4xf32> -> vector<2x4xf32>
    %c0_5 = arith.constant 0 : index
    %c0_6 = arith.constant 0 : index
    %7 = vector.load %arg3[%c0_5, %c0_6] : memref<4x2xf32, #tpu.memory_space<vmem>>, vector<4x2xf32>
    %cst_7 = arith.constant dense<0.000000e+00> : vector<4x4xf32>
    %8 = tpu.matmul %7, %6, %cst_7 {dimension_numbers = #tpu.dot_dimension_numbers<[1], [0], [0], [1], [0, 0, 1, 1], [], []>} : vector<4x2xf32>, vector<2x4xf32>, vector<4x4xf32> -> vector<4x4xf32>
    %c0_8 = arith.constant 0 : index
    %c0_9 = arith.constant 0 : index
    %c0_10 = arith.constant 0 : index
    %9 = vector.load %arg6[%c0_8, %c0_9, %c0_10] : memref<1x4x4xf32, #tpu.memory_space<vmem>>, vector<1x4x4xf32>
    %10 = vector.shape_cast %9 : vector<1x4x4xf32> to vector<4x4xf32>
    %11 = vector.shape_cast %8 : vector<4x4xf32> to vector<1x4x4xf32>
    tpu.vector_store %arg6[%c0_8, %c0_9, %c0_10], %11 {strides = array<i32>} : memref<1x4x4xf32, #tpu.memory_space<vmem>>, vector<1x4x4xf32>,
    %c0_11 = arith.constant 0 : index
    %c0_12 = arith.constant 0 : index
    %12 = vector.load %arg4[%c0_11, %c0_12] : memref<1x2xf32, #tpu.memory_space<vmem>>, vector<1x2xf32>
    %cst_13 = arith.constant dense<0.000000e+00> : vector<1x4xf32>
    %13 = tpu.matmul %12, %6, %cst_13 {dimension_numbers = #tpu.dot_dimension_numbers<[1], [0], [0], [1], [0, 0, 1, 1], [], []>} : vector<1x2xf32>, vector<2x4xf32>, vector<1x4xf32> -> vector<1x4xf32>
    %c0_14 = arith.constant 0 : index
    %c0_15 = arith.constant 0 : index
    %14 = vector.load %arg5[%c0_14, %c0_15] : memref<1x4xf32, #tpu.memory_space<vmem>>, vector<1x4xf32>
    %15 = arith.addf %13, %14 : vector<1x4xf32>
    %c0_16 = arith.constant 0 : index
    %c0_17 = arith.constant 0 : index
    %c0_18 = arith.constant 0 : index
    %16 = vector.load %arg7[%c0_16, %c0_17, %c0_18] : memref<1x1x4xf32, #tpu.memory_space<vmem>>, vector<1x1x4xf32>
    %17 = vector.shape_cast %16 : vector<1x1x4xf32> to vector<1x4xf32>
    %18 = vector.shape_cast %15 : vector<1x4xf32> to vector<1x1x4xf32>
    tpu.vector_store %arg7[%c0_16, %c0_17, %c0_18], %18 {strides = array<i32>} : memref<1x1x4xf32, #tpu.memory_space<vmem>>, vector<1x1x4xf32>,
    return
  }
  func.func @transform_0(%arg0: i32) -> (i32, i32, i32) {
    %c0_i32 = arith.constant 0 : i32
    %c0_i32_0 = arith.constant 0 : i32
    %c0_i32_1 = arith.constant 0 : i32
    return %arg0, %c0_i32, %c0_i32_0 : i32, i32, i32
  }
  func.func @transform_1(%arg0: i32) -> (i32, i32) {
    %c0_i32 = arith.constant 0 : i32
    %c0_i32_0 = arith.constant 0 : i32
    %c0_i32_1 = arith.constant 0 : i32
    return %c0_i32, %c0_i32_0 : i32, i32
  }
  func.func @transform_2(%arg0: i32) -> (i32, i32) {
    %c0_i32 = arith.constant 0 : i32
    %c0_i32_0 = arith.constant 0 : i32
    %c0_i32_1 = arith.constant 0 : i32
    return %c0_i32, %c0_i32_0 : i32, i32
  }
  func.func @transform_3(%arg0: i32) -> (i32, i32) {
    %c0_i32 = arith.constant 0 : i32
    %c0_i32_0 = arith.constant 0 : i32
    %c0_i32_1 = arith.constant 0 : i32
    return %c0_i32, %c0_i32_0 : i32, i32
  }
  func.func @transform_4(%arg0: i32) -> (i32, i32) {
    %c0_i32 = arith.constant 0 : i32
    %c0_i32_0 = arith.constant 0 : i32
    %c0_i32_1 = arith.constant 0 : i32
    return %c0_i32, %c0_i32_0 : i32, i32
  }
  func.func @transform_5(%arg0: i32) -> (i32, i32, i32) {
    %c0_i32 = arith.constant 0 : i32
    %c0_i32_0 = arith.constant 0 : i32
    %c0_i32_1 = arith.constant 0 : i32
    return %arg0, %c0_i32, %c0_i32_0 : i32, i32, i32
  }
  func.func @transform_6(%arg0: i32) -> (i32, i32, i32) {
    %c0_i32 = arith.constant 0 : i32
    %c0_i32_0 = arith.constant 0 : i32
    %c0_i32_1 = arith.constant 0 : i32
    return %arg0, %c0_i32, %c0_i32_0 : i32, i32, i32
  }
}

module attributes {stable_mosaic.version = 11 : i64} {
  func.func @_proj_residual_kernel(%arg0: i32, %arg1: i32, %arg2: memref<1x256x4xf32, #tpu.memory_space<vmem>>, %arg3: memref<1x4x4xf32, #tpu.memory_space<vmem>>, %arg4: memref<1x1x4xf32, #tpu.memory_space<vmem>>, %arg5: memref<1x256x4xf32, #tpu.memory_space<vmem>>) attributes {dimension_semantics = [#tpu.dimension_semantics<parallel>, #tpu.dimension_semantics<parallel>], iteration_bounds = array<i64: 2, 1>, scalar_prefetch = 0 : i64, scratch_operands = 0 : i64, tpu.core_type = #tpu.core_type<tc>, window_params = [{transform_indices = @transform_0, window_bounds = array<i64: 1, 256, 4>}, {transform_indices = @transform_1, window_bounds = array<i64: 1, 4, 4>}, {transform_indices = @transform_2, window_bounds = array<i64: 1, 1, 4>}, {transform_indices = @transform_3, window_bounds = array<i64: 1, 256, 4>}]} {
    %c0 = arith.constant 0 : index
    %c0_0 = arith.constant 0 : index
    %c0_1 = arith.constant 0 : index
    %0 = vector.load %arg2[%c0, %c0_0, %c0_1] : memref<1x256x4xf32, #tpu.memory_space<vmem>>, vector<1x256x4xf32>
    %1 = vector.shape_cast %0 : vector<1x256x4xf32> to vector<256x4xf32>
    %c0_2 = arith.constant 0 : index
    %c0_3 = arith.constant 0 : index
    %c0_4 = arith.constant 0 : index
    %2 = vector.load %arg3[%c0_2, %c0_3, %c0_4] : memref<1x4x4xf32, #tpu.memory_space<vmem>>, vector<1x4x4xf32>
    %3 = vector.shape_cast %2 : vector<1x4x4xf32> to vector<4x4xf32>
    %cst = arith.constant dense<0.000000e+00> : vector<256x4xf32>
    %4 = tpu.matmul %1, %3, %cst {dimension_numbers = #tpu.dot_dimension_numbers<[1], [0], [0], [1], [0, 0, 1, 1], [], []>} : vector<256x4xf32>, vector<4x4xf32>, vector<256x4xf32> -> vector<256x4xf32>
    %c0_5 = arith.constant 0 : index
    %c0_6 = arith.constant 0 : index
    %c0_7 = arith.constant 0 : index
    %5 = vector.load %arg4[%c0_5, %c0_6, %c0_7] : memref<1x1x4xf32, #tpu.memory_space<vmem>>, vector<1x1x4xf32>
    %6 = vector.shape_cast %5 : vector<1x1x4xf32> to vector<1x4xf32>
    %7 = vector.broadcast %6 : vector<1x4xf32> to vector<256x4xf32>
    %8 = arith.addf %4, %7 : vector<256x4xf32>
    %9 = arith.addf %8, %1 : vector<256x4xf32>
    %c0_8 = arith.constant 0 : index
    %c0_9 = arith.constant 0 : index
    %c0_10 = arith.constant 0 : index
    %10 = vector.load %arg5[%c0_8, %c0_9, %c0_10] : memref<1x256x4xf32, #tpu.memory_space<vmem>>, vector<1x256x4xf32>
    %11 = vector.shape_cast %10 : vector<1x256x4xf32> to vector<256x4xf32>
    %12 = vector.shape_cast %9 : vector<256x4xf32> to vector<1x256x4xf32>
    tpu.vector_store %arg5[%c0_8, %c0_9, %c0_10], %12 {strides = array<i32>} : memref<1x256x4xf32, #tpu.memory_space<vmem>>, vector<1x256x4xf32>,
    return
  }
  func.func @transform_0(%arg0: i32, %arg1: i32) -> (i32, i32, i32) {
    %c0_i32 = arith.constant 0 : i32
    %c0_i32_0 = arith.constant 0 : i32
    return %arg0, %arg1, %c0_i32 : i32, i32, i32
  }
  func.func @transform_1(%arg0: i32, %arg1: i32) -> (i32, i32, i32) {
    %c0_i32 = arith.constant 0 : i32
    %c0_i32_0 = arith.constant 0 : i32
    %c0_i32_1 = arith.constant 0 : i32
    return %arg0, %c0_i32, %c0_i32_0 : i32, i32, i32
  }
  func.func @transform_2(%arg0: i32, %arg1: i32) -> (i32, i32, i32) {
    %c0_i32 = arith.constant 0 : i32
    %c0_i32_0 = arith.constant 0 : i32
    %c0_i32_1 = arith.constant 0 : i32
    return %arg0, %c0_i32, %c0_i32_0 : i32, i32, i32
  }
  func.func @transform_3(%arg0: i32, %arg1: i32) -> (i32, i32, i32) {
    %c0_i32 = arith.constant 0 : i32
    %c0_i32_0 = arith.constant 0 : i32
    return %arg0, %arg1, %c0_i32 : i32, i32, i32
  }
}

module attributes {stable_mosaic.version = 11 : i64} {
  func.func @_pg_conv_kernel(%arg0: i32, %arg1: memref<512x4xf32, #tpu.memory_space<vmem>>, %arg2: memref<4x4xf32, #tpu.memory_space<vmem>>, %arg3: memref<1x4xf32, #tpu.memory_space<vmem>>, %arg4: memref<512x4xf32, #tpu.memory_space<vmem>>) attributes {dimension_semantics = [#tpu.dimension_semantics<parallel>], iteration_bounds = array<i64: 1>, scalar_prefetch = 0 : i64, scratch_operands = 0 : i64, tpu.core_type = #tpu.core_type<tc>, window_params = [{transform_indices = @transform_0, window_bounds = array<i64: 512, 4>}, {pipeline_mode = #tpu.pipeline_mode<synchronous>, transform_indices = @transform_1, window_bounds = array<i64: 4, 4>}, {pipeline_mode = #tpu.pipeline_mode<synchronous>, transform_indices = @transform_2, window_bounds = array<i64: 1, 4>}, {transform_indices = @transform_3, window_bounds = array<i64: 512, 4>}]} {
    %c0 = arith.constant 0 : index
    %c0_0 = arith.constant 0 : index
    %0 = vector.load %arg1[%c0, %c0_0] : memref<512x4xf32, #tpu.memory_space<vmem>>, vector<512x4xf32>
    %c0_1 = arith.constant 0 : index
    %c0_2 = arith.constant 0 : index
    %1 = vector.load %arg2[%c0_1, %c0_2] : memref<4x4xf32, #tpu.memory_space<vmem>>, vector<4x4xf32>
    %cst = arith.constant dense<0.000000e+00> : vector<512x4xf32>
    %2 = tpu.matmul %0, %1, %cst {dimension_numbers = #tpu.dot_dimension_numbers<[1], [0], [0], [1], [0, 0, 1, 1], [], []>} : vector<512x4xf32>, vector<4x4xf32>, vector<512x4xf32> -> vector<512x4xf32>
    %c0_3 = arith.constant 0 : index
    %c0_4 = arith.constant 0 : index
    %3 = vector.load %arg3[%c0_3, %c0_4] : memref<1x4xf32, #tpu.memory_space<vmem>>, vector<1x4xf32>
    %4 = vector.broadcast %3 : vector<1x4xf32> to vector<512x4xf32>
    %5 = arith.addf %2, %4 : vector<512x4xf32>
    %c0_5 = arith.constant 0 : index
    %c0_6 = arith.constant 0 : index
    %6 = vector.load %arg4[%c0_5, %c0_6] : memref<512x4xf32, #tpu.memory_space<vmem>>, vector<512x4xf32>
    tpu.vector_store %arg4[%c0_5, %c0_6], %5 {strides = array<i32>} : memref<512x4xf32, #tpu.memory_space<vmem>>, vector<512x4xf32>,
    return
  }
  func.func @transform_0(%arg0: i32) -> (i32, i32) {
    %c0_i32 = arith.constant 0 : i32
    %c0_i32_0 = arith.constant 0 : i32
    return %arg0, %c0_i32 : i32, i32
  }
  func.func @transform_1(%arg0: i32) -> (i32, i32) {
    %c0_i32 = arith.constant 0 : i32
    %c0_i32_0 = arith.constant 0 : i32
    %c0_i32_1 = arith.constant 0 : i32
    return %c0_i32, %c0_i32_0 : i32, i32
  }
  func.func @transform_2(%arg0: i32) -> (i32, i32) {
    %c0_i32 = arith.constant 0 : i32
    %c0_i32_0 = arith.constant 0 : i32
    %c0_i32_1 = arith.constant 0 : i32
    return %c0_i32, %c0_i32_0 : i32, i32
  }
  func.func @transform_3(%arg0: i32) -> (i32, i32) {
    %c0_i32 = arith.constant 0 : i32
    %c0_i32_0 = arith.constant 0 : i32
    return %arg0, %c0_i32 : i32, i32
  }
}

</mosaic_0001>

<bundles_post_ra>
// kernel: nonlocal_block_forward.4
= control target key start
LH: loop header
LB: loop body
LE: loop exit
PB: predicated region body
PF: predicated region fallthrough
CT: control target
= control target key end

     0   :  { %s876_s21 = smov 0   ;;  %s917_s0 = inlined_call_operand.vmem [shape: f32[2,64,4], index: 0, kind: input, shape index: {}]   ;;  %s918_s1 = inlined_call_operand.vmem [shape: f32[2,4], index: 1, kind: input, shape index: {}]   ;;  %s919_s2 = inlined_call_operand.vmem [shape: f32[4,2], index: 2, kind: input, shape index: {}]   ;;  %s920_s3 = inlined_call_operand.vmem [shape: f32[1,2], index: 3, kind: input, shape index: {}]   ;;  %s921_s4 = inlined_call_operand.vmem [shape: f32[1,4], index: 4, kind: input, shape index: {}]   ;;  %s922_s5 = inlined_call_operand.vmem [shape: f32[2,4,4], index: 5, kind: output, shape index: {0}]   ;;  %s923_s6 = inlined_call_operand.vmem [shape: f32[2,1,4], index: 6, kind: output, shape index: {1}]  }
   0x1 LB: > { %s718_s22 = sadd.s32 4294967295, %s835_s21   ;;  %p722_p0 = scmp.ge.s32.totalorder %s835_s21, 1  ;;  %s835_s21 = sphi %s876_s21, %s17_s21  }
   0x2   : > { %p215_p1 = scmp.lt.s32.totalorder %s835_s21, 3 }
   0x4   : > { %p216_p2 = pnand %p722_p0, %p215_p1 }
   0x5   : > { %p247_p3 = scmp.lt.s32.totalorder (!%p216_p2), %s718_s22, 1  ;;  %v837_v0 = vmov (!%p216_p2), 0.0|0.0   ;;  %s838_s27 = smov (!%p216_p2), 126   ;;  %vm839_vm0 = vmmov (!%p216_p2), 0   ;;  %v840_v13 = vmov (!%p216_p2), 0.0   ;;  %vm331_vm1 = vcmask (!%p216_p2), 523264  }
   0x6   : > { %219 = sbr.rel (%p216_p2) target bundleno = 826 (0x33a), region = 40  ;;  %785 = vmatprep.subr.bf16.mxu0 (!%p216_p2), %v837_v0  ;;  %767 = vmatprep.mubr.msk.f32.mxu0 (!%p216_p2), %vm839_vm0, %v840_v13  ;;  %v405_v31 = vld [vmem:[%s918_s1] sm:$0x3] (!%p216_p2)  ;;  %vm410_vm2 = vcmask (!%p216_p2), 1041408   ;;  %vm406_vm3 = vcmask (!%p216_p2), 15360   ;;  %vm561_vm4 = vcmask (!%p216_p2), 27648  }
   0x7   : > { %770 = vmatprep.subr.mxu1 (!%p216_p2), %v840_v13  ;;  %772 = vmatprep.mubr.msk.f32.mxu1 (!%p216_p2), %vm839_vm0, %v840_v13  ;;  %v484_v34 = vld [vmem:[%s919_s2] sm:$0xf] (!%p216_p2)  ;;  %vm638_vm5 = vcmask (!%p216_p2), 24576  }
   0x8   : > { %771 = vmatpush3.msk.msra.mxu1 (!%p216_p2), %vm410_vm2, %v405_v31  ;;  %v563_v37 = vld [vmem:[%s920_s3] sm:$0x1] (!%p216_p2) }
   0x9   : > { %775 = vmatprep.subr.mxu1 (!%p216_p2), %v840_v13  ;;  %v564_v40 = vld [vmem:[%s921_s4] sm:$0x1] (!%p216_p2) }
   0xd   : > { %s925_s22 = smov (!%p247_p3, %s718_s22), 1 }
   0xe   : > { %s735_s23 = sshll.u32 %s925_s22, 6  ;;  %s725_s10 = sshll.u32 %s925_s22, 2 }
   0xf   : > { %s251_s26 = scalar_lea.vmem %s917_s0, %s735_s23  ;;  %s255_s13 = scalar_lea.vmem %s922_s5, %s725_s10 }
  0x10   : > { %v259_v1 = vld [vmem:[%s251_s26] sm:$0xff]  ;;  %v260_v2 = vld [vmem:[%s251_s26 + $0x8] sm:$0xff]  ;;  %v261_v3 = vld [vmem:[%s251_s26 + $0x10] sm:$0xff]  ;;  %s258_s18 = scalar_lea.vmem %s923_s6, %s925_s22 }
  0x11   : > { %v809_v4 = vpack.i.bf16 %v260_v2, %v259_v1  ;;  %v262_v5 = vld [vmem:[%s251_s26 + $0x18] sm:$0xff]  ;;  %v263_v6 = vld [vmem:[%s251_s26 + $0x20] sm:$0xff]  ;;  %v264_v7 = vld [vmem:[%s251_s26 + $0x28] sm:$0xff] }
  0x12   : > { %v819_v8 = vpack.i.bf16 %v264_v7, %v263_v6  ;;  %v265_v9 = vld [vmem:[%s251_s26 + $0x30] sm:$0xff]  ;;  %v266_v10 = vld [vmem:[%s251_s26 + $0x38] sm:$0xff]  ;;  %v814_v11 = vpack.i.bf16 %v262_v5, %v261_v3 }
  0x13   : > { %810 = vrot.lane.b32.xlu0 %v809_v4, %s838_s27  ;;  %v824_v12 = vpack.i.bf16 %v266_v10, %v265_v9 }
  0x14   : > { %820 = vrot.lane.b32.xlu1 %v819_v8, %s838_s27 }
  0x17   : > { %815 = vrot.lane.b32.xlu0 %v814_v11, %s838_s27 }
  0x18   : > { %825 = vrot.lane.b32.xlu1 %v824_v12, %s838_s27 }
  0x35   : > { %267 = vxpose.xlu0.b32.start [1/8] (short) (narrow) %v259_v1, 8 }
  0x39   : > { %268 = vxpose.xlu0.b32.cont [2/8] (short) (narrow) %v260_v2, 8 }
  0x3d   : > { %269 = vxpose.xlu0.b32.cont [3/8] (short) (narrow) %v261_v3, 8 }
  0x41   : > { %270 = vxpose.xlu0.b32.cont [4/8] (short) (narrow) %v262_v5, 8 }
  0x45   : > { %271 = vxpose.xlu0.b32.cont [5/8] (short) (narrow) %v263_v6, 8 }
  0x49   : > { %272 = vxpose.xlu0.b32.cont [6/8] (short) (narrow) %v264_v7, 8 }
  0x4d   : > { %273 = vxpose.xlu0.b32.cont [7/8] (short) (narrow) %v265_v9, 8 }
  0x51   : > { %274 = vxpose.xlu0.b32.end [8/8] (short) (narrow) %v266_v10, 8 }
  0x85   : > { %v811_v14 = vpop.permute.xlu0 %810 }
  0x86   : > { %v813_v15 = vunpack.i.h.bf16 %v811_v14  ;;  %v812_v16 = vunpack.i.l.bf16 %v811_v14  ;;  %v821_v17 = vpop.permute.xlu1 %820 }
  0x87   : > { %v823_v22 = vunpack.i.h.bf16 %v821_v17  ;;  %v822_v23 = vunpack.i.l.bf16 %v821_v17 }
  0x88   : > { %v786_v18 = vpack.c.bf16 %v813_v15, %v812_v16 }
  0x89   : > { %v816_v19 = vpop.permute.xlu0 %815  ;;  %v792_v26 = vpack.c.bf16 %v823_v22, %v822_v23 }
  0x8a   : > { %v818_v20 = vunpack.i.h.bf16 %v816_v19  ;;  %v817_v21 = vunpack.i.l.bf16 %v816_v19  ;;  %787 = vmatpush3.bf16.msra.mxu0 %v786_v18  ;;  %v826_v24 = vpop.permute.xlu1 %825 }
  0x8b   : > { %788 = vmatprep.subr.bf16.mxu0 %v837_v0  ;;  %v828_v27 = vunpack.i.h.bf16 %v826_v24  ;;  %v827_v28 = vunpack.i.l.bf16 %v826_v24 }
  0x8c   : > { %v789_v25 = vpack.c.bf16 %v818_v20, %v817_v21 }
  0x8d   : > { %v795_v29 = vpack.c.bf16 %v828_v27, %v827_v28 }
  0x8e   : > { %790 = vmatpush3.bf16.msra.mxu0 %v789_v25 }
  0x8f   : > { %791 = vmatprep.subr.bf16.mxu0 %v837_v0 }
  0x92   : > { %793 = vmatpush3.bf16.msra.mxu0 %v792_v26 }
  0x93   : > { %794 = vmatprep.subr.bf16.mxu0 %v837_v0 }
  0x96   : > { %796 = vmatpush3.bf16.msra.mxu0 %v795_v29 }
  0xb5   : > { %v283_v30 = vpop.trf.xlu0 }
  0xb6   : > { %768 = vmatmul.mubr.msk.f32.vlgmr.msra.gmra.mrb[0].mxu0 %vm331_vm1, %v283_v30 }
 0x189   : > { %v401_v32 = vpop.f32.mrb[0].mxu0 }
 0x18a   : > { %v769_v33 = vpop.f32.mrb[1].mxu0  ;;  %773 = vmatmul.mubr.msk.f32.vlgmr.msra.gmra.mrb[0].mxu1 %vm406_vm3, %v401_v32 }
 0x18b   : > { %777 = vmatprep.mubr.msk.f32.mxu1 %vm839_vm0, %v840_v13 }
 0x25d   : > { %v480_v35 = vpop.f32.mrb[0].mxu1 }
 0x25e   : > { %v774_v36 = vpop.f32.mrb[1].mxu1  ;;  %776 = vmatpush3.msk.msra.mxu1 %vm410_vm2, %v480_v35 }
 0x25f   : > { %780 = vmatprep.subr.mxu1 %v840_v13  ;;  %778 = vmatmul.mubr.msk.f32.vlgmr.msra.gmra.mrb[2].mxu1 %vm406_vm3, %v484_v34 }
 0x260   : > { %781 = vmatpush3.msk.msra.mxu1 %vm410_vm2, %v480_v35  ;;  %782 = vmatprep.mubr.msk.f32.mxu1 %vm839_vm0, %v840_v13 }
 0x263   : > { %783 = vmatmul.mubr.msk.f32.vlgmr.msra.gmra.mrb[4].mxu1 %vm406_vm3, %v563_v37 }
 0x332   : > { %v557_v38 = vpop.f32.mrb[2].mxu1 }
 0x333   : > { %562 = vst.msk [vmem:[%s255_s13] sm:$0xf] %vm561_vm4, %v557_v38  ;;  %v779_v39 = vpop.f32.mrb[3].mxu1 }
 0x336   : > { %v634_v41 = vpop.f32.mrb[4].mxu1 }
 0x337   : > { %v635_v42 = vadd.f32 %v634_v41, %v564_v40  ;;  %v784_v43 = vpop.f32.mrb[5].mxu1 }
 0x339   : > { %639 = vst.msk [vmem:[%s258_s18] sm:$0x1] %vm638_vm5, %v635_v42 }
 0x33a PF: > { %s17_s21 = sadd.s32 1, %s835_s21  }
 0x33b   : > { %p14_p4 = scmp.ge.s32.totalorder %s17_s21, 4  }
 0x33d   :  { %16 = sbr.rel (!%p14_p4) target bundleno = 1 (0x1), region = 82 }

// kernel: nonlocal_block_forward.5
= control target key start
LH: loop header
LB: loop body
LE: loop exit
PB: predicated region body
PF: predicated region fallthrough
CT: control target
= control target key end

     0   :  { %s980_s12 = smov 0   ;;  %s982_s13 = smov 0   ;;  %s1322_s0 = inlined_call_operand.vmem [shape: f32[2,256,4], index: 0, kind: input, shape index: {}]   ;;  %s1323_s1 = inlined_call_operand.vmem [shape: f32[2,4,4], index: 1, kind: input, shape index: {}]   ;;  %s1324_s2 = inlined_call_operand.vmem [shape: f32[2,1,4], index: 2, kind: input, shape index: {}]   ;;  %s1325_s3 = inlined_call_operand.vmem [shape: f32[2,256,4], index: 3, kind: output, shape index: {}]  }
   0x1   :  { %s984_s14 = smov 0  }
   0x2 LB: > { %s25_s15 = sadd.s32 1, %s954_s13  ;;  %p783_p0 = scmp.ge.s32.totalorder %s958_s14, 1  ;;  %s958_s14 = sphi %s984_s14, %s13_s14   ;;  %s954_s13 = sphi %s982_s13, %s1327_s13   ;;  %s950_s12 = sphi %s980_s12, %s1326_s12  }
   0x3   : > { %p27_p1 = scmp.ge.s32.totalorder %s25_s15, 2  ;;  %p175_p2 = scmp.lt.s32.totalorder %s958_s14, 3 }
   0x5   : > { %s1329_s15 = smov (%p27_p1, %s25_s15), 0  ;;  %p176_p3 = pnand %p783_p0, %p175_p2 }
   0x6   : > { %p215_p4 = scmp.lt.s32.totalorder (!%p176_p3), %s950_s12, 1  ;;  %vm378_vm0 = vcmask (!%p176_p3), 1043456   ;;  %vm281_vm1 = vcmask (!%p176_p3), 31744  }
   0x7   : > { %179 = sbr.rel (%p176_p3) target bundleno = 267 (0x10b), region = 32 }
   0xe   : > { %s1331_s12 = smov (!%p215_p4, %s950_s12), 1 }
   0xf   : > { %s825_s16 = sshll.u32 %s1331_s12, 8  ;;  %s786_s17 = sshll.u32 %s1331_s12, 2 }
  0x10   : > { %s1007_s20 = scalar_lea.vmem %s1322_s0, %s825_s16  ;;  %s227_s23 = scalar_lea.vmem %s1323_s1, %s786_s17 }
  0x11   : > { %v273_v0 = vld [vmem:[%s227_s23] sm:$0xf]  ;;  %v1019_v3 = vld [vmem:[%s1007_s20 + $0x8] sm:$0xff]  ;;  %v1025_v5 = vld [vmem:[%s1007_s20 + $0x10] sm:$0xff]  ;;  %s230_s26 = scalar_lea.vmem %s1324_s2, %s1331_s12  ;;  %s1185_s29 = scalar_lea.vmem %s1325_s3, %s825_s16 }
  0x12   : > { %v1013_v1 = vld [vmem:[%s1007_s20] sm:$0xff]  ;;  %860 = vmatprep.subr.msk.mxu0 %vm378_vm0, %v273_v0  ;;  %910 = vmatprep.subr.msk.mxu1 %vm378_vm0, %v273_v0  ;;  %v1022_v4 = vld [vmem:[%s1007_s20 + $0x88] sm:$0xff]  ;;  %v1028_v6 = vld [vmem:[%s1007_s20 + $0x90] sm:$0xff] }
  0x13   : > { %v1016_v2 = vld [vmem:[%s1007_s20 + $0x80] sm:$0xff]  ;;  %861 = vmatpush3.msk.msra.mxu0 %vm378_vm0, %v273_v0  ;;  %911 = vmatpush3.msk.msra.mxu1 %vm378_vm0, %v273_v0  ;;  %v1043_v7 = vld [vmem:[%s1007_s20 + $0x18] sm:$0xff]  ;;  %v1063_v11 = vld [vmem:[%s1007_s20 + $0x28] sm:$0xff] }
  0x14   : > { %862 = vmatprep.mubr.msk.f32.mxu0 %vm281_vm1, %v1013_v1  ;;  %886 = vmatprep.mubr.msk.f32.mxu1 %vm281_vm1, %v1016_v2  ;;  %v1046_v8 = vld [vmem:[%s1007_s20 + $0x98] sm:$0xff]  ;;  %v1049_v9 = vld [vmem:[%s1007_s20 + $0x20] sm:$0xff]  ;;  %v1066_v12 = vld [vmem:[%s1007_s20 + $0xa8] sm:$0xff] }
  0x15   : > { %863 = vmatmul.mubr.msk.f32.vlgmr.msra.gmra.mrb[0].mxu0 %vm281_vm1, %v1019_v3  ;;  %887 = vmatmul.mubr.msk.f32.vlgmr.msra.gmra.mrb[0].mxu1 %vm281_vm1, %v1022_v4  ;;  %v1052_v10 = vld [vmem:[%s1007_s20 + $0xa0] sm:$0xff]  ;;  %v1069_v13 = vld [vmem:[%s1007_s20 + $0x30] sm:$0xff]  ;;  %v1083_v15 = vld [vmem:[%s1007_s20 + $0x38] sm:$0xff] }
  0x16   : > { %865 = vmatprep.mubr.msk.f32.mxu0 %vm281_vm1, %v1025_v5  ;;  %889 = vmatprep.mubr.msk.f32.mxu1 %vm281_vm1, %v1028_v6  ;;  %v1072_v14 = vld [vmem:[%s1007_s20 + $0xb0] sm:$0xff]  ;;  %v1086_v16 = vld [vmem:[%s1007_s20 + $0xb8] sm:$0xff]  ;;  %v1089_v17 = vld [vmem:[%s1007_s20 + $0x40] sm:$0xff] }
  0x17   : > { %v1092_v18 = vld [vmem:[%s1007_s20 + $0xc0] sm:$0xff]  ;;  %v1103_v19 = vld [vmem:[%s1007_s20 + $0x48] sm:$0xff]  ;;  %v1109_v21 = vld [vmem:[%s1007_s20 + $0x50] sm:$0xff] }
  0x18   : > { %v1106_v20 = vld [vmem:[%s1007_s20 + $0xc8] sm:$0xff]  ;;  %v1112_v22 = vld [vmem:[%s1007_s20 + $0xd0] sm:$0xff]  ;;  %v1123_v23 = vld [vmem:[%s1007_s20 + $0x58] sm:$0xff] }
  0x19   : > { %866 = vmatmul.mubr.msk.f32.gmra.mrb[2].mxu0 %vm281_vm1, %v1043_v7  ;;  %890 = vmatmul.mubr.msk.f32.gmra.mrb[2].mxu1 %vm281_vm1, %v1046_v8  ;;  %v1126_v24 = vld [vmem:[%s1007_s20 + $0xd8] sm:$0xff]  ;;  %v1129_v25 = vld [vmem:[%s1007_s20 + $0x60] sm:$0xff]  ;;  %v1143_v27 = vld [vmem:[%s1007_s20 + $0x68] sm:$0xff] }
  0x1a   : > { %868 = vmatprep.mubr.msk.f32.mxu0 %vm281_vm1, %v1049_v9  ;;  %892 = vmatprep.mubr.msk.f32.mxu1 %vm281_vm1, %v1052_v10  ;;  %v1132_v26 = vld [vmem:[%s1007_s20 + $0xe0] sm:$0xff]  ;;  %v1146_v28 = vld [vmem:[%s1007_s20 + $0xe8] sm:$0xff]  ;;  %v1149_v29 = vld [vmem:[%s1007_s20 + $0x70] sm:$0xff] }
  0x1b   : > { %v1152_v30 = vld [vmem:[%s1007_s20 + $0xf0] sm:$0xff]  ;;  %v1163_v31 = vld [vmem:[%s1007_s20 + $0x78] sm:$0xff]  ;;  %v1176_v33 = vld [vmem:[%s230_s26] ss:$0 sm:$0xff] }
  0x1c   : > { %v1166_v32 = vld [vmem:[%s1007_s20 + $0xf8] sm:$0xff] }
  0x1d   : > { %869 = vmatmul.mubr.msk.f32.gmra.mrb[4].mxu0 %vm281_vm1, %v1063_v11  ;;  %893 = vmatmul.mubr.msk.f32.gmra.mrb[4].mxu1 %vm281_vm1, %v1066_v12 }
  0x1e   : > { %871 = vmatprep.mubr.msk.f32.mxu0 %vm281_vm1, %v1069_v13  ;;  %895 = vmatprep.mubr.msk.f32.mxu1 %vm281_vm1, %v1072_v14 }
  0x21   : > { %872 = vmatmul.mubr.msk.f32.gmra.mrb[6].mxu0 %vm281_vm1, %v1083_v15  ;;  %896 = vmatmul.mubr.msk.f32.gmra.mrb[6].mxu1 %vm281_vm1, %v1086_v16 }
  0x22   : > { %874 = vmatprep.mubr.msk.f32.mxu0 %vm281_vm1, %v1089_v17  ;;  %898 = vmatprep.mubr.msk.f32.mxu1 %vm281_vm1, %v1092_v18 }
  0x25   : > { %875 = vmatmul.mubr.msk.f32.gmra.mrb[8].mxu0 %vm281_vm1, %v1103_v19  ;;  %899 = vmatmul.mubr.msk.f32.gmra.mrb[8].mxu1 %vm281_vm1, %v1106_v20 }
  0x26   : > { %877 = vmatprep.mubr.msk.f32.mxu0 %vm281_vm1, %v1109_v21  ;;  %901 = vmatprep.mubr.msk.f32.mxu1 %vm281_vm1, %v1112_v22 }
  0x29   : > { %878 = vmatmul.mubr.msk.f32.gmra.mrb[10].mxu0 %vm281_vm1, %v1123_v23  ;;  %902 = vmatmul.mubr.msk.f32.gmra.mrb[10].mxu1 %vm281_vm1, %v1126_v24 }
  0x2a   : > { %880 = vmatprep.mubr.msk.f32.mxu0 %vm281_vm1, %v1129_v25  ;;  %904 = vmatprep.mubr.msk.f32.mxu1 %vm281_vm1, %v1132_v26 }
  0x2d   : > { %881 = vmatmul.mubr.msk.f32.gmra.mrb[12].mxu0 %vm281_vm1, %v1143_v27  ;;  %905 = vmatmul.mubr.msk.f32.gmra.mrb[12].mxu1 %vm281_vm1, %v1146_v28 }
  0x2e   : > { %883 = vmatprep.mubr.msk.f32.mxu0 %vm281_vm1, %v1149_v29  ;;  %907 = vmatprep.mubr.msk.f32.mxu1 %vm281_vm1, %v1152_v30 }
  0x31   : > { %884 = vmatmul.mubr.msk.f32.gmra.mrb[14].mxu0 %vm281_vm1, %v1163_v31  ;;  %908 = vmatmul.mubr.msk.f32.gmra.mrb[14].mxu1 %vm281_vm1, %v1166_v32 }
  0xe8   : > { %v864_v34 = vpop.f32.mrb[0].mxu0  ;;  %v888_v35 = vpop.f32.mrb[0].mxu1 }
  0xe9   : > { %v454_v36 = vadd.f32 %v864_v34, %v1176_v33  ;;  %v534_v37 = vadd.f32 %v888_v35, %v1176_v33  ;;  %v448_v38 = vpop.f32.mrb[1].mxu0  ;;  %v528_v39 = vpop.f32.mrb[1].mxu1 }
  0xea   : > { %v449_v40 = vadd.f32 %v1176_v33, %v448_v38  ;;  %v529_v41 = vadd.f32 %v1176_v33, %v528_v39 }
  0xeb   : > { %v608_v42 = vadd.f32 %v454_v36, %v1019_v3  ;;  %v624_v43 = vadd.f32 %v534_v37, %v1022_v4 }
  0xec   : > { %v607_v44 = vadd.f32 %v449_v40, %v1013_v1  ;;  %v623_v45 = vadd.f32 %v529_v41, %v1016_v2  ;;  %v867_v46 = vpop.f32.mrb[2].mxu0  ;;  %v891_v47 = vpop.f32.mrb[2].mxu1 }
  0xed   : > { %640 = vst.msk [vmem:[%s1185_s29 + $0x8] sm:$0xff] %vm281_vm1, %v608_v42  ;;  %656 = vst.msk [vmem:[%s1185_s29 + $0x88] sm:$0xff] %vm281_vm1, %v624_v43  ;;  %v464_v48 = vadd.f32 %v867_v46, %v1176_v33  ;;  %v544_v49 = vadd.f32 %v891_v47, %v1176_v33  ;;  %v458_v50 = vpop.f32.mrb[3].mxu0  ;;  %v538_v51 = vpop.f32.mrb[3].mxu1 }
  0xee   : > { %639 = vst.msk [vmem:[%s1185_s29] sm:$0xff] %vm281_vm1, %v607_v44  ;;  %655 = vst.msk [vmem:[%s1185_s29 + $0x80] sm:$0xff] %vm281_vm1, %v623_v45  ;;  %v459_v52 = vadd.f32 %v1176_v33, %v458_v50  ;;  %v539_v53 = vadd.f32 %v1176_v33, %v538_v51 }
  0xef   : > { %v610_v54 = vadd.f32 %v464_v48, %v1043_v7  ;;  %v626_v55 = vadd.f32 %v544_v49, %v1046_v8 }
  0xf0   : > { %v609_v56 = vadd.f32 %v459_v52, %v1025_v5  ;;  %v625_v57 = vadd.f32 %v539_v53, %v1028_v6  ;;  %v870_v58 = vpop.f32.mrb[4].mxu0  ;;  %v894_v59 = vpop.f32.mrb[4].mxu1 }
  0xf1   : > { %642 = vst.msk [vmem:[%s1185_s29 + $0x18] sm:$0xff] %vm281_vm1, %v610_v54  ;;  %658 = vst.msk [vmem:[%s1185_s29 + $0x98] sm:$0xff] %vm281_vm1, %v626_v55  ;;  %v474_v60 = vadd.f32 %v870_v58, %v1176_v33  ;;  %v554_v61 = vadd.f32 %v894_v59, %v1176_v33  ;;  %v468_v62 = vpop.f32.mrb[5].mxu0  ;;  %v548_v63 = vpop.f32.mrb[5].mxu1 }
  0xf2   : > { %641 = vst.msk [vmem:[%s1185_s29 + $0x10] sm:$0xff] %vm281_vm1, %v609_v56  ;;  %657 = vst.msk [vmem:[%s1185_s29 + $0x90] sm:$0xff] %vm281_vm1, %v625_v57  ;;  %v469_v0 = vadd.f32 %v1176_v33, %v468_v62  ;;  %v549_v1 = vadd.f32 %v1176_v33, %v548_v63 }
  0xf3   : > { %v612_v2 = vadd.f32 %v474_v60, %v1063_v11  ;;  %v628_v3 = vadd.f32 %v554_v61, %v1066_v12 }
  0xf4   : > { %v611_v4 = vadd.f32 %v469_v0, %v1049_v9  ;;  %v627_v5 = vadd.f32 %v549_v1, %v1052_v10  ;;  %v873_v6 = vpop.f32.mrb[6].mxu0  ;;  %v897_v7 = vpop.f32.mrb[6].mxu1 }
  0xf5   : > { %644 = vst.msk [vmem:[%s1185_s29 + $0x28] sm:$0xff] %vm281_vm1, %v612_v2  ;;  %660 = vst.msk [vmem:[%s1185_s29 + $0xa8] sm:$0xff] %vm281_vm1, %v628_v3  ;;  %v484_v8 = vadd.f32 %v873_v6, %v1176_v33  ;;  %v564_v34 = vadd.f32 %v897_v7, %v1176_v33  ;;  %v478_v35 = vpop.f32.mrb[7].mxu0  ;;  %v558_v11 = vpop.f32.mrb[7].mxu1 }
  0xf6   : > { %643 = vst.msk [vmem:[%s1185_s29 + $0x20] sm:$0xff] %vm281_vm1, %v611_v4  ;;  %659 = vst.msk [vmem:[%s1185_s29 + $0xa0] sm:$0xff] %vm281_vm1, %v627_v5  ;;  %v479_v9 = vadd.f32 %v1176_v33, %v478_v35  ;;  %v559_v10 = vadd.f32 %v1176_v33, %v558_v11 }
  0xf7   : > { %v614_v12 = vadd.f32 %v484_v8, %v1083_v15  ;;  %v630_v36 = vadd.f32 %v564_v34, %v1086_v16 }
  0xf8   : > { %v613_v37 = vadd.f32 %v479_v9, %v1069_v13  ;;  %v629_v38 = vadd.f32 %v559_v10, %v1072_v14  ;;  %v876_v39 = vpop.f32.mrb[8].mxu0  ;;  %v900_v40 = vpop.f32.mrb[8].mxu1 }
  0xf9   : > { %646 = vst.msk [vmem:[%s1185_s29 + $0x38] sm:$0xff] %vm281_vm1, %v614_v12  ;;  %662 = vst.msk [vmem:[%s1185_s29 + $0xb8] sm:$0xff] %vm281_vm1, %v630_v36  ;;  %v494_v41 = vadd.f32 %v876_v39, %v1176_v33  ;;  %v574_v42 = vadd.f32 %v900_v40, %v1176_v33  ;;  %v488_v43 = vpop.f32.mrb[9].mxu0  ;;  %v568_v15 = vpop.f32.mrb[9].mxu1 }
  0xfa   : > { %645 = vst.msk [vmem:[%s1185_s29 + $0x30] sm:$0xff] %vm281_vm1, %v613_v37  ;;  %661 = vst.msk [vmem:[%s1185_s29 + $0xb0] sm:$0xff] %vm281_vm1, %v629_v38  ;;  %v489_v13 = vadd.f32 %v1176_v33, %v488_v43  ;;  %v569_v14 = vadd.f32 %v1176_v33, %v568_v15 }
  0xfb   : > { %v616_v16 = vadd.f32 %v494_v41, %v1103_v19  ;;  %v632_v44 = vadd.f32 %v574_v42, %v1106_v20 }
  0xfc   : > { %v615_v45 = vadd.f32 %v489_v13, %v1089_v17  ;;  %v631_v46 = vadd.f32 %v569_v14, %v1092_v18  ;;  %v879_v47 = vpop.f32.mrb[10].mxu0  ;;  %v903_v48 = vpop.f32.mrb[10].mxu1 }
  0xfd   : > { %648 = vst.msk [vmem:[%s1185_s29 + $0x48] sm:$0xff] %vm281_vm1, %v616_v16  ;;  %664 = vst.msk [vmem:[%s1185_s29 + $0xc8] sm:$0xff] %vm281_vm1, %v632_v44  ;;  %v504_v49 = vadd.f32 %v879_v47, %v1176_v33  ;;  %v584_v50 = vadd.f32 %v903_v48, %v1176_v33  ;;  %v498_v51 = vpop.f32.mrb[11].mxu0  ;;  %v578_v19 = vpop.f32.mrb[11].mxu1 }
  0xfe   : > { %647 = vst.msk [vmem:[%s1185_s29 + $0x40] sm:$0xff] %vm281_vm1, %v615_v45  ;;  %663 = vst.msk [vmem:[%s1185_s29 + $0xc0] sm:$0xff] %vm281_vm1, %v631_v46  ;;  %v499_v17 = vadd.f32 %v1176_v33, %v498_v51  ;;  %v579_v18 = vadd.f32 %v1176_v33, %v578_v19 }
  0xff   : > { %v618_v20 = vadd.f32 %v504_v49, %v1123_v23  ;;  %v634_v52 = vadd.f32 %v584_v50, %v1126_v24 }
 0x100   : > { %v617_v53 = vadd.f32 %v499_v17, %v1109_v21  ;;  %v633_v54 = vadd.f32 %v579_v18, %v1112_v22  ;;  %v882_v55 = vpop.f32.mrb[12].mxu0  ;;  %v906_v56 = vpop.f32.mrb[12].mxu1 }
 0x101   : > { %650 = vst.msk [vmem:[%s1185_s29 + $0x58] sm:$0xff] %vm281_vm1, %v618_v20  ;;  %666 = vst.msk [vmem:[%s1185_s29 + $0xd8] sm:$0xff] %vm281_vm1, %v634_v52  ;;  %v514_v57 = vadd.f32 %v882_v55, %v1176_v33  ;;  %v594_v58 = vadd.f32 %v906_v56, %v1176_v33  ;;  %v508_v59 = vpop.f32.mrb[13].mxu0  ;;  %v588_v23 = vpop.f32.mrb[13].mxu1 }
 0x102   : > { %649 = vst.msk [vmem:[%s1185_s29 + $0x50] sm:$0xff] %vm281_vm1, %v617_v53  ;;  %665 = vst.msk [vmem:[%s1185_s29 + $0xd0] sm:$0xff] %vm281_vm1, %v633_v54  ;;  %v509_v21 = vadd.f32 %v1176_v33, %v508_v59  ;;  %v589_v22 = vadd.f32 %v1176_v33, %v588_v23 }
 0x103   : > { %v620_v24 = vadd.f32 %v514_v57, %v1143_v27  ;;  %v636_v60 = vadd.f32 %v594_v58, %v1146_v28 }
 0x104   : > { %v619_v61 = vadd.f32 %v509_v21, %v1129_v25  ;;  %v635_v62 = vadd.f32 %v589_v22, %v1132_v26  ;;  %v885_v63 = vpop.f32.mrb[14].mxu0  ;;  %v909_v0 = vpop.f32.mrb[14].mxu1 }
 0x105   : > { %652 = vst.msk [vmem:[%s1185_s29 + $0x68] sm:$0xff] %vm281_vm1, %v620_v24  ;;  %668 = vst.msk [vmem:[%s1185_s29 + $0xe8] sm:$0xff] %vm281_vm1, %v636_v60  ;;  %v524_v1 = vadd.f32 %v885_v63, %v1176_v33  ;;  %v604_v27 = vadd.f32 %v909_v0, %v1176_v33  ;;  %v518_v2 = vpop.f32.mrb[15].mxu0  ;;  %v598_v28 = vpop.f32.mrb[15].mxu1 }
 0x106   : > { %651 = vst.msk [vmem:[%s1185_s29 + $0x60] sm:$0xff] %vm281_vm1, %v619_v61  ;;  %667 = vst.msk [vmem:[%s1185_s29 + $0xe0] sm:$0xff] %vm281_vm1, %v635_v62  ;;  %v519_v25 = vadd.f32 %v1176_v33, %v518_v2  ;;  %v599_v26 = vadd.f32 %v1176_v33, %v598_v28 }
 0x107   : > { %v622_v3 = vadd.f32 %v524_v1, %v1163_v31  ;;  %v638_v4 = vadd.f32 %v604_v27, %v1166_v32 }
 0x108   : > { %v621_v5 = vadd.f32 %v519_v25, %v1149_v29  ;;  %v637_v6 = vadd.f32 %v599_v26, %v1152_v30 }
 0x109   : > { %654 = vst.msk [vmem:[%s1185_s29 + $0x78] sm:$0xff] %vm281_vm1, %v622_v3  ;;  %670 = vst.msk [vmem:[%s1185_s29 + $0xf8] sm:$0xff] %vm281_vm1, %v638_v4 }
 0x10a   : > { %653 = vst.msk [vmem:[%s1185_s29 + $0x70] sm:$0xff] %vm281_vm1, %v621_v5  ;;  %669 = vst.msk [vmem:[%s1185_s29 + $0xf0] sm:$0xff] %vm281_vm1, %v637_v6 }
 0x10b PF: > { %s13_s14 = sadd.s32 1, %s958_s14   ;;  %s1326_s12 = smov %s954_s13 }
 0x10c   : > { %p10_p5 = scmp.ge.s32.totalorder %s13_s14, 4   ;;  %s1327_s13 = smov %s1329_s15 }
 0x10e   :  { %12 = sbr.rel (!%p10_p5) target bundleno = 2 (0x2), region = 68 }

// kernel: nonlocal_block_forward.3
= control target key start
LH: loop header
LB: loop body
LE: loop exit
PB: predicated region body
PF: predicated region fallthrough
CT: control target
= control target key end

     0   :  { %vm279_vm0 = vcmask 1043456   ;;  %vm86_vm1 = vcmask 31744   ;;  %s1571_s1 = inlined_call_operand.vmem [shape: f32[4,4], index: 1, kind: input, shape index: {}]   ;;  %s1572_s0 = inlined_call_operand.vmem [shape: f32[512,4], index: 0, kind: input, shape index: {}]   ;;  %s1573_s2 = inlined_call_operand.vmem [shape: f32[1,4], index: 2, kind: input, shape index: {}]   ;;  %s1574_s3 = inlined_call_operand.vmem [shape: f32[512,4], index: 3, kind: output, shape index: {}]  }
   0x1   :  { %v78_v0 = vld [vmem:[%s1571_s1] sm:$0xf]  ;;  %v15_v3 = vld [vmem:[%s1572_s0 + $0x8] sm:$0xff]  ;;  %v16_v5 = vld [vmem:[%s1572_s0 + $0x10] sm:$0xff] }
   0x2   :  { %v14_v1 = vld [vmem:[%s1572_s0] sm:$0xff]  ;;  %867 = vmatprep.subr.msk.mxu0 %vm279_vm0, %v78_v0  ;;  %965 = vmatprep.subr.msk.mxu1 %vm279_vm0, %v78_v0  ;;  %v47_v4 = vld [vmem:[%s1572_s0 + $0x108] sm:$0xff]  ;;  %v48_v6 = vld [vmem:[%s1572_s0 + $0x110] sm:$0xff] }
   0x3   :  { %v46_v2 = vld [vmem:[%s1572_s0 + $0x100] sm:$0xff]  ;;  %868 = vmatpush3.msk.msra.mxu0 %vm279_vm0, %v78_v0  ;;  %966 = vmatpush3.msk.msra.mxu1 %vm279_vm0, %v78_v0  ;;  %v17_v7 = vld [vmem:[%s1572_s0 + $0x18] sm:$0xff]  ;;  %v19_v11 = vld [vmem:[%s1572_s0 + $0x28] sm:$0xff] }
   0x4   :  { %869 = vmatprep.mubr.msk.f32.mxu0 %vm86_vm1, %v14_v1  ;;  %917 = vmatprep.mubr.msk.f32.mxu1 %vm86_vm1, %v46_v2  ;;  %v49_v8 = vld [vmem:[%s1572_s0 + $0x118] sm:$0xff]  ;;  %v18_v9 = vld [vmem:[%s1572_s0 + $0x20] sm:$0xff]  ;;  %v51_v12 = vld [vmem:[%s1572_s0 + $0x128] sm:$0xff] }
   0x5   :  { %870 = vmatmul.mubr.msk.f32.vlgmr.msra.gmra.mrb[0].mxu0 %vm86_vm1, %v15_v3  ;;  %918 = vmatmul.mubr.msk.f32.vlgmr.msra.gmra.mrb[0].mxu1 %vm86_vm1, %v47_v4  ;;  %v50_v10 = vld [vmem:[%s1572_s0 + $0x120] sm:$0xff]  ;;  %v20_v13 = vld [vmem:[%s1572_s0 + $0x30] sm:$0xff]  ;;  %v21_v15 = vld [vmem:[%s1572_s0 + $0x38] sm:$0xff] }
   0x6   :  { %872 = vmatprep.mubr.msk.f32.mxu0 %vm86_vm1, %v16_v5  ;;  %920 = vmatprep.mubr.msk.f32.mxu1 %vm86_vm1, %v48_v6  ;;  %v52_v14 = vld [vmem:[%s1572_s0 + $0x130] sm:$0xff]  ;;  %v53_v16 = vld [vmem:[%s1572_s0 + $0x138] sm:$0xff]  ;;  %v22_v17 = vld [vmem:[%s1572_s0 + $0x40] sm:$0xff] }
   0x7   :  { %v54_v18 = vld [vmem:[%s1572_s0 + $0x140] sm:$0xff]  ;;  %v23_v19 = vld [vmem:[%s1572_s0 + $0x48] sm:$0xff]  ;;  %v24_v21 = vld [vmem:[%s1572_s0 + $0x50] sm:$0xff] }
   0x8   :  { %v55_v20 = vld [vmem:[%s1572_s0 + $0x148] sm:$0xff]  ;;  %v56_v22 = vld [vmem:[%s1572_s0 + $0x150] sm:$0xff]  ;;  %v25_v23 = vld [vmem:[%s1572_s0 + $0x58] sm:$0xff] }
   0x9   :  { %873 = vmatmul.mubr.msk.f32.gmra.mrb[2].mxu0 %vm86_vm1, %v17_v7  ;;  %921 = vmatmul.mubr.msk.f32.gmra.mrb[2].mxu1 %vm86_vm1, %v49_v8  ;;  %v57_v24 = vld [vmem:[%s1572_s0 + $0x158] sm:$0xff]  ;;  %v26_v25 = vld [vmem:[%s1572_s0 + $0x60] sm:$0xff]  ;;  %v27_v27 = vld [vmem:[%s1572_s0 + $0x68] sm:$0xff] }
   0xa   :  { %875 = vmatprep.mubr.msk.f32.mxu0 %vm86_vm1, %v18_v9  ;;  %923 = vmatprep.mubr.msk.f32.mxu1 %vm86_vm1, %v50_v10  ;;  %v58_v26 = vld [vmem:[%s1572_s0 + $0x160] sm:$0xff]  ;;  %v59_v28 = vld [vmem:[%s1572_s0 + $0x168] sm:$0xff]  ;;  %v28_v29 = vld [vmem:[%s1572_s0 + $0x70] sm:$0xff] }
   0xb   :  { %v60_v30 = vld [vmem:[%s1572_s0 + $0x170] sm:$0xff]  ;;  %v29_v31 = vld [vmem:[%s1572_s0 + $0x78] sm:$0xff]  ;;  %v30_v33 = vld [vmem:[%s1572_s0 + $0x80] sm:$0xff] }
   0xc   :  { %v61_v32 = vld [vmem:[%s1572_s0 + $0x178] sm:$0xff]  ;;  %v62_v34 = vld [vmem:[%s1572_s0 + $0x180] sm:$0xff]  ;;  %v31_v35 = vld [vmem:[%s1572_s0 + $0x88] sm:$0xff] }
   0xd   :  { %876 = vmatmul.mubr.msk.f32.gmra.mrb[4].mxu0 %vm86_vm1, %v19_v11  ;;  %924 = vmatmul.mubr.msk.f32.gmra.mrb[4].mxu1 %vm86_vm1, %v51_v12  ;;  %v63_v36 = vld [vmem:[%s1572_s0 + $0x188] sm:$0xff]  ;;  %v32_v37 = vld [vmem:[%s1572_s0 + $0x90] sm:$0xff]  ;;  %v33_v39 = vld [vmem:[%s1572_s0 + $0x98] sm:$0xff] }
   0xe   :  { %878 = vmatprep.mubr.msk.f32.mxu0 %vm86_vm1, %v20_v13  ;;  %926 = vmatprep.mubr.msk.f32.mxu1 %vm86_vm1, %v52_v14  ;;  %v64_v38 = vld [vmem:[%s1572_s0 + $0x190] sm:$0xff]  ;;  %v65_v40 = vld [vmem:[%s1572_s0 + $0x198] sm:$0xff]  ;;  %v34_v41 = vld [vmem:[%s1572_s0 + $0xa0] sm:$0xff] }
   0xf   :  { %v66_v42 = vld [vmem:[%s1572_s0 + $0x1a0] sm:$0xff]  ;;  %v35_v43 = vld [vmem:[%s1572_s0 + $0xa8] sm:$0xff]  ;;  %v36_v45 = vld [vmem:[%s1572_s0 + $0xb0] sm:$0xff] }
  0x10   :  { %v67_v44 = vld [vmem:[%s1572_s0 + $0x1a8] sm:$0xff]  ;;  %v68_v46 = vld [vmem:[%s1572_s0 + $0x1b0] sm:$0xff]  ;;  %v37_v47 = vld [vmem:[%s1572_s0 + $0xb8] sm:$0xff] }
  0x11   :  { %879 = vmatmul.mubr.msk.f32.gmra.mrb[6].mxu0 %vm86_vm1, %v21_v15  ;;  %927 = vmatmul.mubr.msk.f32.gmra.mrb[6].mxu1 %vm86_vm1, %v53_v16  ;;  %v69_v48 = vld [vmem:[%s1572_s0 + $0x1b8] sm:$0xff]  ;;  %v38_v49 = vld [vmem:[%s1572_s0 + $0xc0] sm:$0xff]  ;;  %v39_v51 = vld [vmem:[%s1572_s0 + $0xc8] sm:$0xff] }
  0x12   :  { %881 = vmatprep.mubr.msk.f32.mxu0 %vm86_vm1, %v22_v17  ;;  %929 = vmatprep.mubr.msk.f32.mxu1 %vm86_vm1, %v54_v18  ;;  %v70_v50 = vld [vmem:[%s1572_s0 + $0x1c0] sm:$0xff]  ;;  %v71_v52 = vld [vmem:[%s1572_s0 + $0x1c8] sm:$0xff]  ;;  %v40_v53 = vld [vmem:[%s1572_s0 + $0xd0] sm:$0xff] }
  0x13   :  { %v72_v54 = vld [vmem:[%s1572_s0 + $0x1d0] sm:$0xff]  ;;  %v41_v55 = vld [vmem:[%s1572_s0 + $0xd8] sm:$0xff]  ;;  %v42_v57 = vld [vmem:[%s1572_s0 + $0xe0] sm:$0xff] }
  0x14   :  { %v73_v56 = vld [vmem:[%s1572_s0 + $0x1d8] sm:$0xff]  ;;  %v74_v58 = vld [vmem:[%s1572_s0 + $0x1e0] sm:$0xff]  ;;  %v43_v59 = vld [vmem:[%s1572_s0 + $0xe8] sm:$0xff] }
  0x15   :  { %882 = vmatmul.mubr.msk.f32.gmra.mrb[8].mxu0 %vm86_vm1, %v23_v19  ;;  %930 = vmatmul.mubr.msk.f32.gmra.mrb[8].mxu1 %vm86_vm1, %v55_v20  ;;  %v75_v60 = vld [vmem:[%s1572_s0 + $0x1e8] sm:$0xff]  ;;  %v44_v61 = vld [vmem:[%s1572_s0 + $0xf0] sm:$0xff]  ;;  %v45_v63 = vld [vmem:[%s1572_s0 + $0xf8] sm:$0xff] }
  0x16   :  { %884 = vmatprep.mubr.msk.f32.mxu0 %vm86_vm1, %v24_v21  ;;  %932 = vmatprep.mubr.msk.f32.mxu1 %vm86_vm1, %v56_v22  ;;  %v76_v62 = vld [vmem:[%s1572_s0 + $0x1f0] sm:$0xff]  ;;  %v77_v0 = vld [vmem:[%s1572_s0 + $0x1f8] sm:$0xff]  ;;  %v1249_v1 = vld [vmem:[%s1573_s2] ss:$0 sm:$0xff] }
  0x19   :  { %885 = vmatmul.mubr.msk.f32.gmra.mrb[10].mxu0 %vm86_vm1, %v25_v23  ;;  %933 = vmatmul.mubr.msk.f32.gmra.mrb[10].mxu1 %vm86_vm1, %v57_v24 }
  0x1a   :  { %887 = vmatprep.mubr.msk.f32.mxu0 %vm86_vm1, %v26_v25  ;;  %935 = vmatprep.mubr.msk.f32.mxu1 %vm86_vm1, %v58_v26 }
  0x1d   :  { %888 = vmatmul.mubr.msk.f32.gmra.mrb[12].mxu0 %vm86_vm1, %v27_v27  ;;  %936 = vmatmul.mubr.msk.f32.gmra.mrb[12].mxu1 %vm86_vm1, %v59_v28 }
  0x1e   :  { %890 = vmatprep.mubr.msk.f32.mxu0 %vm86_vm1, %v28_v29  ;;  %938 = vmatprep.mubr.msk.f32.mxu1 %vm86_vm1, %v60_v30 }
  0x21   :  { %891 = vmatmul.mubr.msk.f32.gmra.mrb[14].mxu0 %vm86_vm1, %v29_v31  ;;  %939 = vmatmul.mubr.msk.f32.gmra.mrb[14].mxu1 %vm86_vm1, %v61_v32 }
  0x22   :  { %893 = vmatprep.mubr.msk.f32.mxu0 %vm86_vm1, %v30_v33  ;;  %941 = vmatprep.mubr.msk.f32.mxu1 %vm86_vm1, %v62_v34 }
  0x25   :  { %894 = vmatmul.mubr.msk.f32.gmra.mrb[16].mxu0 %vm86_vm1, %v31_v35  ;;  %942 = vmatmul.mubr.msk.f32.gmra.mrb[16].mxu1 %vm86_vm1, %v63_v36 }
  0x26   :  { %896 = vmatprep.mubr.msk.f32.mxu0 %vm86_vm1, %v32_v37  ;;  %944 = vmatprep.mubr.msk.f32.mxu1 %vm86_vm1, %v64_v38 }
  0x29   :  { %897 = vmatmul.mubr.msk.f32.gmra.mrb[18].mxu0 %vm86_vm1, %v33_v39  ;;  %945 = vmatmul.mubr.msk.f32.gmra.mrb[18].mxu1 %vm86_vm1, %v65_v40 }
  0x2a   :  { %899 = vmatprep.mubr.msk.f32.mxu0 %vm86_vm1, %v34_v41  ;;  %947 = vmatprep.mubr.msk.f32.mxu1 %vm86_vm1, %v66_v42 }
  0x2d   :  { %900 = vmatmul.mubr.msk.f32.gmra.mrb[20].mxu0 %vm86_vm1, %v35_v43  ;;  %948 = vmatmul.mubr.msk.f32.gmra.mrb[20].mxu1 %vm86_vm1, %v67_v44 }
  0x2e   :  { %902 = vmatprep.mubr.msk.f32.mxu0 %vm86_vm1, %v36_v45  ;;  %950 = vmatprep.mubr.msk.f32.mxu1 %vm86_vm1, %v68_v46 }
  0x31   :  { %903 = vmatmul.mubr.msk.f32.gmra.mrb[22].mxu0 %vm86_vm1, %v37_v47  ;;  %951 = vmatmul.mubr.msk.f32.gmra.mrb[22].mxu1 %vm86_vm1, %v69_v48 }
  0x32   :  { %905 = vmatprep.mubr.msk.f32.mxu0 %vm86_vm1, %v38_v49  ;;  %953 = vmatprep.mubr.msk.f32.mxu1 %vm86_vm1, %v70_v50 }
  0x35   :  { %906 = vmatmul.mubr.msk.f32.gmra.mrb[24].mxu0 %vm86_vm1, %v39_v51  ;;  %954 = vmatmul.mubr.msk.f32.gmra.mrb[24].mxu1 %vm86_vm1, %v71_v52 }
  0x36   :  { %908 = vmatprep.mubr.msk.f32.mxu0 %vm86_vm1, %v40_v53  ;;  %956 = vmatprep.mubr.msk.f32.mxu1 %vm86_vm1, %v72_v54 }
  0x39   :  { %909 = vmatmul.mubr.msk.f32.gmra.mrb[26].mxu0 %vm86_vm1, %v41_v55  ;;  %957 = vmatmul.mubr.msk.f32.gmra.mrb[26].mxu1 %vm86_vm1, %v73_v56 }
  0x3a   :  { %911 = vmatprep.mubr.msk.f32.mxu0 %vm86_vm1, %v42_v57  ;;  %959 = vmatprep.mubr.msk.f32.mxu1 %vm86_vm1, %v74_v58 }
  0x3d   :  { %912 = vmatmul.mubr.msk.f32.gmra.mrb[28].mxu0 %vm86_vm1, %v43_v59  ;;  %960 = vmatmul.mubr.msk.f32.gmra.mrb[28].mxu1 %vm86_vm1, %v75_v60 }
  0x3e   :  { %914 = vmatprep.mubr.msk.f32.mxu0 %vm86_vm1, %v44_v61  ;;  %962 = vmatprep.mubr.msk.f32.mxu1 %vm86_vm1, %v76_v62 }
  0x41   :  { %915 = vmatmul.mubr.msk.f32.gmra.mrb[30].mxu0 %vm86_vm1, %v45_v63  ;;  %963 = vmatmul.mubr.msk.f32.gmra.mrb[30].mxu1 %vm86_vm1, %v77_v0 }
  0xd8   :  { %v871_v2 = vpop.f32.mrb[0].mxu0  ;;  %v919_v3 = vpop.f32.mrb[0].mxu1 }
  0xd9   :  { %v355_v4 = vadd.f32 %v871_v2, %v1249_v1  ;;  %v515_v5 = vadd.f32 %v919_v3, %v1249_v1  ;;  %v349_v6 = vpop.f32.mrb[1].mxu0  ;;  %v509_v7 = vpop.f32.mrb[1].mxu1 }
  0xda   :  { %v350_v8 = vadd.f32 %v1249_v1, %v349_v6  ;;  %v510_v9 = vadd.f32 %v1249_v1, %v509_v7 }
  0xdb   :  { %669 = vst.msk [vmem:[%s1574_s3 + $0x8] sm:$0xff] %vm86_vm1, %v355_v4  ;;  %701 = vst.msk [vmem:[%s1574_s3 + $0x108] sm:$0xff] %vm86_vm1, %v515_v5 }
  0xdc   :  { %668 = vst.msk [vmem:[%s1574_s3] sm:$0xff] %vm86_vm1, %v350_v8  ;;  %700 = vst.msk [vmem:[%s1574_s3 + $0x100] sm:$0xff] %vm86_vm1, %v510_v9  ;;  %v874_v10 = vpop.f32.mrb[2].mxu0  ;;  %v922_v11 = vpop.f32.mrb[2].mxu1 }
  0xdd   :  { %v365_v12 = vadd.f32 %v874_v10, %v1249_v1  ;;  %v525_v13 = vadd.f32 %v922_v11, %v1249_v1  ;;  %v359_v14 = vpop.f32.mrb[3].mxu0  ;;  %v519_v15 = vpop.f32.mrb[3].mxu1 }
  0xde   :  { %v360_v16 = vadd.f32 %v1249_v1, %v359_v14  ;;  %v520_v17 = vadd.f32 %v1249_v1, %v519_v15 }
  0xdf   :  { %671 = vst.msk [vmem:[%s1574_s3 + $0x18] sm:$0xff] %vm86_vm1, %v365_v12  ;;  %703 = vst.msk [vmem:[%s1574_s3 + $0x118] sm:$0xff] %vm86_vm1, %v525_v13 }
  0xe0   :  { %670 = vst.msk [vmem:[%s1574_s3 + $0x10] sm:$0xff] %vm86_vm1, %v360_v16  ;;  %702 = vst.msk [vmem:[%s1574_s3 + $0x110] sm:$0xff] %vm86_vm1, %v520_v17  ;;  %v877_v18 = vpop.f32.mrb[4].mxu0  ;;  %v925_v19 = vpop.f32.mrb[4].mxu1 }
  0xe1   :  { %v375_v20 = vadd.f32 %v877_v18, %v1249_v1  ;;  %v535_v21 = vadd.f32 %v925_v19, %v1249_v1  ;;  %v369_v22 = vpop.f32.mrb[5].mxu0  ;;  %v529_v23 = vpop.f32.mrb[5].mxu1 }
  0xe2   :  { %v370_v24 = vadd.f32 %v1249_v1, %v369_v22  ;;  %v530_v25 = vadd.f32 %v1249_v1, %v529_v23 }
  0xe3   :  { %673 = vst.msk [vmem:[%s1574_s3 + $0x28] sm:$0xff] %vm86_vm1, %v375_v20  ;;  %705 = vst.msk [vmem:[%s1574_s3 + $0x128] sm:$0xff] %vm86_vm1, %v535_v21 }
  0xe4   :  { %672 = vst.msk [vmem:[%s1574_s3 + $0x20] sm:$0xff] %vm86_vm1, %v370_v24  ;;  %704 = vst.msk [vmem:[%s1574_s3 + $0x120] sm:$0xff] %vm86_vm1, %v530_v25  ;;  %v880_v26 = vpop.f32.mrb[6].mxu0  ;;  %v928_v27 = vpop.f32.mrb[6].mxu1 }
  0xe5   :  { %v385_v28 = vadd.f32 %v880_v26, %v1249_v1  ;;  %v545_v29 = vadd.f32 %v928_v27, %v1249_v1  ;;  %v379_v30 = vpop.f32.mrb[7].mxu0  ;;  %v539_v31 = vpop.f32.mrb[7].mxu1 }
  0xe6   :  { %v380_v32 = vadd.f32 %v1249_v1, %v379_v30  ;;  %v540_v33 = vadd.f32 %v1249_v1, %v539_v31 }
  0xe7   :  { %675 = vst.msk [vmem:[%s1574_s3 + $0x38] sm:$0xff] %vm86_vm1, %v385_v28  ;;  %707 = vst.msk [vmem:[%s1574_s3 + $0x138] sm:$0xff] %vm86_vm1, %v545_v29 }
  0xe8   :  { %674 = vst.msk [vmem:[%s1574_s3 + $0x30] sm:$0xff] %vm86_vm1, %v380_v32  ;;  %706 = vst.msk [vmem:[%s1574_s3 + $0x130] sm:$0xff] %vm86_vm1, %v540_v33  ;;  %v883_v34 = vpop.f32.mrb[8].mxu0  ;;  %v931_v35 = vpop.f32.mrb[8].mxu1 }
  0xe9   :  { %v395_v36 = vadd.f32 %v883_v34, %v1249_v1  ;;  %v555_v37 = vadd.f32 %v931_v35, %v1249_v1  ;;  %v389_v38 = vpop.f32.mrb[9].mxu0  ;;  %v549_v39 = vpop.f32.mrb[9].mxu1 }
  0xea   :  { %v390_v40 = vadd.f32 %v1249_v1, %v389_v38  ;;  %v550_v41 = vadd.f32 %v1249_v1, %v549_v39 }
  0xeb   :  { %677 = vst.msk [vmem:[%s1574_s3 + $0x48] sm:$0xff] %vm86_vm1, %v395_v36  ;;  %709 = vst.msk [vmem:[%s1574_s3 + $0x148] sm:$0xff] %vm86_vm1, %v555_v37 }
  0xec   :  { %676 = vst.msk [vmem:[%s1574_s3 + $0x40] sm:$0xff] %vm86_vm1, %v390_v40  ;;  %708 = vst.msk [vmem:[%s1574_s3 + $0x140] sm:$0xff] %vm86_vm1, %v550_v41  ;;  %v886_v42 = vpop.f32.mrb[10].mxu0  ;;  %v934_v43 = vpop.f32.mrb[10].mxu1 }
  0xed   :  { %v405_v44 = vadd.f32 %v886_v42, %v1249_v1  ;;  %v565_v45 = vadd.f32 %v934_v43, %v1249_v1  ;;  %v399_v46 = vpop.f32.mrb[11].mxu0  ;;  %v559_v47 = vpop.f32.mrb[11].mxu1 }
  0xee   :  { %v400_v48 = vadd.f32 %v1249_v1, %v399_v46  ;;  %v560_v49 = vadd.f32 %v1249_v1, %v559_v47 }
  0xef   :  { %679 = vst.msk [vmem:[%s1574_s3 + $0x58] sm:$0xff] %vm86_vm1, %v405_v44  ;;  %711 = vst.msk [vmem:[%s1574_s3 + $0x158] sm:$0xff] %vm86_vm1, %v565_v45 }
  0xf0   :  { %678 = vst.msk [vmem:[%s1574_s3 + $0x50] sm:$0xff] %vm86_vm1, %v400_v48  ;;  %710 = vst.msk [vmem:[%s1574_s3 + $0x150] sm:$0xff] %vm86_vm1, %v560_v49  ;;  %v889_v50 = vpop.f32.mrb[12].mxu0  ;;  %v937_v51 = vpop.f32.mrb[12].mxu1 }
  0xf1   :  { %v415_v52 = vadd.f32 %v889_v50, %v1249_v1  ;;  %v575_v53 = vadd.f32 %v937_v51, %v1249_v1  ;;  %v409_v54 = vpop.f32.mrb[13].mxu0  ;;  %v569_v55 = vpop.f32.mrb[13].mxu1 }
  0xf2   :  { %v410_v56 = vadd.f32 %v1249_v1, %v409_v54  ;;  %v570_v57 = vadd.f32 %v1249_v1, %v569_v55 }
  0xf3   :  { %681 = vst.msk [vmem:[%s1574_s3 + $0x68] sm:$0xff] %vm86_vm1, %v415_v52  ;;  %713 = vst.msk [vmem:[%s1574_s3 + $0x168] sm:$0xff] %vm86_vm1, %v575_v53 }
  0xf4   :  { %680 = vst.msk [vmem:[%s1574_s3 + $0x60] sm:$0xff] %vm86_vm1, %v410_v56  ;;  %712 = vst.msk [vmem:[%s1574_s3 + $0x160] sm:$0xff] %vm86_vm1, %v570_v57  ;;  %v892_v58 = vpop.f32.mrb[14].mxu0  ;;  %v940_v59 = vpop.f32.mrb[14].mxu1 }
  0xf5   :  { %v425_v60 = vadd.f32 %v892_v58, %v1249_v1  ;;  %v585_v61 = vadd.f32 %v940_v59, %v1249_v1  ;;  %v419_v62 = vpop.f32.mrb[15].mxu0  ;;  %v579_v63 = vpop.f32.mrb[15].mxu1 }
  0xf6   :  { %v420_v0 = vadd.f32 %v1249_v1, %v419_v62  ;;  %v580_v2 = vadd.f32 %v1249_v1, %v579_v63 }
  0xf7   :  { %683 = vst.msk [vmem:[%s1574_s3 + $0x78] sm:$0xff] %vm86_vm1, %v425_v60  ;;  %715 = vst.msk [vmem:[%s1574_s3 + $0x178] sm:$0xff] %vm86_vm1, %v585_v61 }
  0xf8   :  { %682 = vst.msk [vmem:[%s1574_s3 + $0x70] sm:$0xff] %vm86_vm1, %v420_v0  ;;  %714 = vst.msk [vmem:[%s1574_s3 + $0x170] sm:$0xff] %vm86_vm1, %v580_v2  ;;  %v895_v3 = vpop.f32.mrb[16].mxu0  ;;  %v943_v4 = vpop.f32.mrb[16].mxu1 }
  0xf9   :  { %v435_v5 = vadd.f32 %v895_v3, %v1249_v1  ;;  %v595_v6 = vadd.f32 %v943_v4, %v1249_v1  ;;  %v429_v7 = vpop.f32.mrb[17].mxu0  ;;  %v589_v8 = vpop.f32.mrb[17].mxu1 }
  0xfa   :  { %v430_v9 = vadd.f32 %v1249_v1, %v429_v7  ;;  %v590_v10 = vadd.f32 %v1249_v1, %v589_v8 }
  0xfb   :  { %685 = vst.msk [vmem:[%s1574_s3 + $0x88] sm:$0xff] %vm86_vm1, %v435_v5  ;;  %717 = vst.msk [vmem:[%s1574_s3 + $0x188] sm:$0xff] %vm86_vm1, %v595_v6 }
  0xfc   :  { %684 = vst.msk [vmem:[%s1574_s3 + $0x80] sm:$0xff] %vm86_vm1, %v430_v9  ;;  %716 = vst.msk [vmem:[%s1574_s3 + $0x180] sm:$0xff] %vm86_vm1, %v590_v10  ;;  %v898_v11 = vpop.f32.mrb[18].mxu0  ;;  %v946_v12 = vpop.f32.mrb[18].mxu1 }
  0xfd   :  { %v445_v13 = vadd.f32 %v898_v11, %v1249_v1  ;;  %v605_v14 = vadd.f32 %v946_v12, %v1249_v1  ;;  %v439_v15 = vpop.f32.mrb[19].mxu0  ;;  %v599_v16 = vpop.f32.mrb[19].mxu1 }
  0xfe   :  { %v440_v17 = vadd.f32 %v1249_v1, %v439_v15  ;;  %v600_v18 = vadd.f32 %v1249_v1, %v599_v16 }
  0xff   :  { %687 = vst.msk [vmem:[%s1574_s3 + $0x98] sm:$0xff] %vm86_vm1, %v445_v13  ;;  %719 = vst.msk [vmem:[%s1574_s3 + $0x198] sm:$0xff] %vm86_vm1, %v605_v14 }
 0x100   :  { %686 = vst.msk [vmem:[%s1574_s3 + $0x90] sm:$0xff] %vm86_vm1, %v440_v17  ;;  %718 = vst.msk [vmem:[%s1574_s3 + $0x190] sm:$0xff] %vm86_vm1, %v600_v18  ;;  %v901_v19 = vpop.f32.mrb[20].mxu0  ;;  %v949_v20 = vpop.f32.mrb[20].mxu1 }
 0x101   :  { %v455_v21 = vadd.f32 %v901_v19, %v1249_v1  ;;  %v615_v22 = vadd.f32 %v949_v20, %v1249_v1  ;;  %v449_v23 = vpop.f32.mrb[21].mxu0  ;;  %v609_v24 = vpop.f32.mrb[21].mxu1 }
 0x102   :  { %v450_v25 = vadd.f32 %v1249_v1, %v449_v23  ;;  %v610_v26 = vadd.f32 %v1249_v1, %v609_v24 }
 0x103   :  { %689 = vst.msk [vmem:[%s1574_s3 + $0xa8] sm:$0xff] %vm86_vm1, %v455_v21  ;;  %721 = vst.msk [vmem:[%s1574_s3 + $0x1a8] sm:$0xff] %vm86_vm1, %v615_v22 }
 0x104   :  { %688 = vst.msk [vmem:[%s1574_s3 + $0xa0] sm:$0xff] %vm86_vm1, %v450_v25  ;;  %720 = vst.msk [vmem:[%s1574_s3 + $0x1a0] sm:$0xff] %vm86_vm1, %v610_v26  ;;  %v904_v27 = vpop.f32.mrb[22].mxu0  ;;  %v952_v28 = vpop.f32.mrb[22].mxu1 }
 0x105   :  { %v465_v29 = vadd.f32 %v904_v27, %v1249_v1  ;;  %v625_v30 = vadd.f32 %v952_v28, %v1249_v1  ;;  %v459_v31 = vpop.f32.mrb[23].mxu0  ;;  %v619_v32 = vpop.f32.mrb[23].mxu1 }
 0x106   :  { %v460_v33 = vadd.f32 %v1249_v1, %v459_v31  ;;  %v620_v34 = vadd.f32 %v1249_v1, %v619_v32 }
 0x107   :  { %691 = vst.msk [vmem:[%s1574_s3 + $0xb8] sm:$0xff] %vm86_vm1, %v465_v29  ;;  %723 = vst.msk [vmem:[%s1574_s3 + $0x1b8] sm:$0xff] %vm86_vm1, %v625_v30 }
 0x108   :  { %690 = vst.msk [vmem:[%s1574_s3 + $0xb0] sm:$0xff] %vm86_vm1, %v460_v33  ;;  %722 = vst.msk [vmem:[%s1574_s3 + $0x1b0] sm:$0xff] %vm86_vm1, %v620_v34  ;;  %v907_v35 = vpop.f32.mrb[24].mxu0  ;;  %v955_v36 = vpop.f32.mrb[24].mxu1 }
 0x109   :  { %v475_v37 = vadd.f32 %v907_v35, %v1249_v1  ;;  %v635_v38 = vadd.f32 %v955_v36, %v1249_v1  ;;  %v469_v39 = vpop.f32.mrb[25].mxu0  ;;  %v629_v40 = vpop.f32.mrb[25].mxu1 }
 0x10a   :  { %v470_v41 = vadd.f32 %v1249_v1, %v469_v39  ;;  %v630_v42 = vadd.f32 %v1249_v1, %v629_v40 }
 0x10b   :  { %693 = vst.msk [vmem:[%s1574_s3 + $0xc8] sm:$0xff] %vm86_vm1, %v475_v37  ;;  %725 = vst.msk [vmem:[%s1574_s3 + $0x1c8] sm:$0xff] %vm86_vm1, %v635_v38 }
 0x10c   :  { %692 = vst.msk [vmem:[%s1574_s3 + $0xc0] sm:$0xff] %vm86_vm1, %v470_v41  ;;  %724 = vst.msk [vmem:[%s1574_s3 + $0x1c0] sm:$0xff] %vm86_vm1, %v630_v42  ;;  %v910_v43 = vpop.f32.mrb[26].mxu0  ;;  %v958_v44 = vpop.f32.mrb[26].mxu1 }
 0x10d   :  { %v485_v45 = vadd.f32 %v910_v43, %v1249_v1  ;;  %v645_v46 = vadd.f32 %v958_v44, %v1249_v1  ;;  %v479_v47 = vpop.f32.mrb[27].mxu0  ;;  %v639_v48 = vpop.f32.mrb[27].mxu1 }
 0x10e   :  { %v480_v49 = vadd.f32 %v1249_v1, %v479_v47  ;;  %v640_v50 = vadd.f32 %v1249_v1, %v639_v48 }
 0x10f   :  { %695 = vst.msk [vmem:[%s1574_s3 + $0xd8] sm:$0xff] %vm86_vm1, %v485_v45  ;;  %727 = vst.msk [vmem:[%s1574_s3 + $0x1d8] sm:$0xff] %vm86_vm1, %v645_v46 }
 0x110   :  { %694 = vst.msk [vmem:[%s1574_s3 + $0xd0] sm:$0xff] %vm86_vm1, %v480_v49  ;;  %726 = vst.msk [vmem:[%s1574_s3 + $0x1d0] sm:$0xff] %vm86_vm1, %v640_v50  ;;  %v913_v51 = vpop.f32.mrb[28].mxu0  ;;  %v961_v52 = vpop.f32.mrb[28].mxu1 }
 0x111   :  { %v495_v53 = vadd.f32 %v913_v51, %v1249_v1  ;;  %v655_v54 = vadd.f32 %v961_v52, %v1249_v1  ;;  %v489_v55 = vpop.f32.mrb[29].mxu0  ;;  %v649_v56 = vpop.f32.mrb[29].mxu1 }
 0x112   :  { %v490_v57 = vadd.f32 %v1249_v1, %v489_v55  ;;  %v650_v58 = vadd.f32 %v1249_v1, %v649_v56 }
 0x113   :  { %697 = vst.msk [vmem:[%s1574_s3 + $0xe8] sm:$0xff] %vm86_vm1, %v495_v53  ;;  %729 = vst.msk [vmem:[%s1574_s3 + $0x1e8] sm:$0xff] %vm86_vm1, %v655_v54 }
 0x114   :  { %696 = vst.msk [vmem:[%s1574_s3 + $0xe0] sm:$0xff] %vm86_vm1, %v490_v57  ;;  %728 = vst.msk [vmem:[%s1574_s3 + $0x1e0] sm:$0xff] %vm86_vm1, %v650_v58  ;;  %v916_v59 = vpop.f32.mrb[30].mxu0  ;;  %v964_v60 = vpop.f32.mrb[30].mxu1 }
 0x115   :  { %v505_v61 = vadd.f32 %v916_v59, %v1249_v1  ;;  %v665_v62 = vadd.f32 %v964_v60, %v1249_v1  ;;  %v499_v63 = vpop.f32.mrb[31].mxu0  ;;  %v659_v0 = vpop.f32.mrb[31].mxu1 }
 0x116   :  { %v500_v2 = vadd.f32 %v1249_v1, %v499_v63  ;;  %v660_v3 = vadd.f32 %v1249_v1, %v659_v0 }
 0x117   :  { %699 = vst.msk [vmem:[%s1574_s3 + $0xf8] sm:$0xff] %vm86_vm1, %v505_v61  ;;  %731 = vst.msk [vmem:[%s1574_s3 + $0x1f8] sm:$0xff] %vm86_vm1, %v665_v62 }
 0x118   :  { %698 = vst.msk [vmem:[%s1574_s3 + $0xf0] sm:$0xff] %vm86_vm1, %v500_v2  ;;  %730 = vst.msk [vmem:[%s1574_s3 + $0x1f0] sm:$0xff] %vm86_vm1, %v660_v3 }

</bundles_post_ra>
